<compile_context>
chip_gen: v7x
topology: tpu7x:2x2x1
jax: 0.10.0
libtpu: 0.0.40
codegen_flags: <defaults>
</compile_context>

<pallas_src>
import jax
import jax.numpy as jnp
from jax.experimental import pallas as pl
from jax.experimental.pallas import tpu as pltpu


def _pro_network_kernel(cls_ref, node_ref, mask_ref,
                        wp_ref, bp_ref, wd_ref, bd_ref,
                        out_ref,
                        gsum_ref, dsum_ref):
    """Grid = (batch blocks, seq blocks). Accumulate masked readout over seq."""
    s = pl.program_id(1)
    ns = pl.num_programs(1)

    @pl.when(s == 0)
    def _init():
        gsum_ref[...] = jnp.zeros_like(gsum_ref)
        dsum_ref[...] = jnp.zeros_like(dsum_ref)

    node = node_ref[...]                               # (TB, TS, G)  bf16
    mask = mask_ref[...]                               # (TB, 1, TS)  f32
    mask_b = mask.astype(node.dtype)                   # tiny cast, 0/1 exact in bf16

    # Masked sum over the sequence tile on the MXU: batched (1,TS) @ (TS,G).
    gsum_ref[...] += jnp.einsum('bqs,bsg->bqg', mask_b, node,
                                preferred_element_type=jnp.float32)   # (TB,1,G)
    dsum_ref[...] += jnp.sum(mask, axis=2, keepdims=True)             # (TB,1,1)

    @pl.when(s == ns - 1)
    def _finalize():
        # --- transformer pooler: cls_emb = tanh(cls @ Wp + bp) ---
        cls_bf = cls_ref[...].astype(jnp.bfloat16)                     # (TB, H)
        cls_emb = jnp.tanh(
            jnp.dot(cls_bf, wp_ref[...], preferred_element_type=jnp.float32)
            + bp_ref[...])                                             # (TB, H) f32

        # --- graph readout: masked mean over sequence ---
        denom = jnp.maximum(dsum_ref[...][:, 0, :], 1.0)               # (TB, 1)
        graph_emb = gsum_ref[...][:, 0, :] / denom                     # (TB, G) f32

        # --- pro_dense: Dropout (inference no-op) + Linear on concat ---
        # TODO(synk): dropout is an identity here (eval mode); no train-time mask.
        pro = jnp.concatenate([cls_emb, graph_emb], axis=-1).astype(jnp.bfloat16)
        out = (jnp.dot(pro, wd_ref[...], preferred_element_type=jnp.float32)
               + bd_ref[...])                                          # (TB, D)
        out_ref[...] = out.astype(out_ref.dtype)


def pro_network_forward(cls_tok, node_emb, amino_mask,
                        w_pool, b_pool, w_dense, b_dense,
                        *, tb=8, ts=128):
    """cls_tok: (B,H) f32; node_emb: (B,S,G) bf16; amino_mask: (B,S)."""
    B, H = cls_tok.shape
    _, S, G = node_emb.shape
    D = w_dense.shape[-1]
    assert B % tb == 0, "batch must divide batch tile"
    assert S % ts == 0 and (ts % 128 == 0 or ts == S), "seq tile must be lane-aligned"

    mask3 = amino_mask.reshape(B, 1, S).astype(jnp.float32)

    return pl.pallas_call(
        _pro_network_kernel,
        out_shape=jax.ShapeDtypeStruct((B, D), jnp.float32),
        grid_spec=pltpu.PrefetchScalarGridSpec(
            num_scalar_prefetch=0,
            grid=(B // tb, S // ts),
            in_specs=[
                pl.BlockSpec((tb, H), lambda b, s: (b, 0)),            # CLS rows
                pl.BlockSpec((tb, ts, G), lambda b, s: (b, s, 0)),     # node emb (bf16)
                pl.BlockSpec((tb, 1, ts), lambda b, s: (b, 0, s)),     # amino mask
                pl.BlockSpec((H, H), lambda b, s: (0, 0)),             # w_pool (grid-invariant)
                pl.BlockSpec((1, H), lambda b, s: (0, 0)),             # b_pool
                pl.BlockSpec((H + G, D), lambda b, s: (0, 0)),         # w_dense (un-split)
                pl.BlockSpec((1, D), lambda b, s: (0, 0)),             # b_dense
            ],
            out_specs=pl.BlockSpec((tb, D), lambda b, s: (b, 0)),
            scratch_shapes=[
                pltpu.VMEM((tb, 1, G), jnp.float32),   # masked-sum accumulator
                pltpu.VMEM((tb, 1, 1), jnp.float32),   # mask-count accumulator
            ],
        ),
        compiler_params=pltpu.CompilerParams(
            dimension_semantics=("parallel", "arbitrary"),
            vmem_limit_bytes=32 * 1024 * 1024,
        ),
    )(cls_tok, node_emb, mask3, w_pool, b_pool, w_dense, b_dense)


if __name__ == "__main__":
    key = jax.random.PRNGKey(0)
    ks = jax.random.split(key, 12)

    # Small but lane-dense shapes consistent with the module's forward.
    B, S = 16, 256
    H = 128      # pro_seq_dim (transformer hidden_size)
    G = 128      # pro_struc_dim (graph dim)
    D = 128      # pro_dim (pro_dense output)
    vocab = 25   # ~ amino-acid vocabulary

    # --- module inputs (deterministic) ---
    token_inputs = jax.random.randint(ks[0], (B, S), 0, vocab)
    attention_mask = jnp.ones((B, S), jnp.float32)       # unused by surrogate transformer
    token_type_ids = jnp.zeros((B, S), jnp.int32)
    amino_inputs = jax.random.randint(ks[1], (B, S), 0, vocab)
    degree_inputs = jax.random.randint(ks[2], (B, S), 1, 5).astype(jnp.float32)
    lengths = jax.random.randint(ks[3], (B,), S // 4, S + 1)
    amino_mask_inputs = (jnp.arange(S)[None, :] < lengths[:, None]).astype(jnp.float32)

    # --- deterministic parameters (shapes implied by the module's __init__) ---
    tok_emb_table = 0.02 * jax.random.normal(ks[4], (vocab, H), jnp.float32)
    type_emb_table = 0.02 * jax.random.normal(ks[5], (2, H), jnp.float32)
    amino_emb_table = 0.02 * jax.random.normal(ks[6], (vocab, G), jnp.float32)
    w_pool = (0.05 * jax.random.normal(ks[7], (H, H), jnp.float32)).astype(jnp.bfloat16)
    b_pool = 0.01 * jax.random.normal(ks[8], (1, H), jnp.float32)
    # nn.Linear(pro_seq_dim + pro_struc_dim, pro_dim): single un-split weight
    w_dense = (0.05 * jax.random.normal(ks[9], (H + G, D), jnp.float32)).astype(jnp.bfloat16)
    b_dense = 0.01 * jax.random.normal(ks[10], (1, D), jnp.float32)

    # TODO(synk): ProTransformer_20w / ProGAT internals are external (undefined in the
    # given source); surrogate embedding lookups produce the last-hidden sequence
    # embedding and graph node embeddings consumed by the kernel.
    seq_emb = tok_emb_table[token_inputs] + type_emb_table[token_type_ids]    # (B,S,H) f32
    node_emb = (amino_emb_table[amino_inputs]
                * degree_inputs[..., None]).astype(jnp.bfloat16)              # (B,S,G) bf16

    cls_tok = seq_emb[:, 0, :]   # only the CLS row is handed to the kernel (no S-long DMA)

    pro_emb = pro_network_forward(cls_tok, node_emb, amino_mask_inputs,
                                  w_pool, b_pool, w_dense, b_dense)
    jax.block_until_ready(pro_emb)
    assert pro_emb.shape == (B, D) and pro_emb.dtype == jnp.float32

    # --- plain-JAX reference (f32 math on the same bf16-rounded operands) ---
    node_f = node_emb.astype(jnp.float32)
    cls_ref = jnp.tanh(cls_tok @ w_pool.astype(jnp.float32) + b_pool)
    graph_ref = (node_f * amino_mask_inputs[..., None]).sum(1) / jnp.maximum(
        amino_mask_inputs.sum(1, keepdims=True), 1.0)
    ref = jnp.concatenate([cls_ref, graph_ref], axis=1) @ w_dense.astype(jnp.float32) + b_dense
    assert jnp.allclose(pro_emb, ref, atol=2e-2, rtol=2e-2), "mismatch vs. plain-JAX reference"

    print("KERNEL_OK")
</pallas_src>

<mosaic_0001>
module attributes {stable_mosaic.version = 11 : i64} {
  func.func @_pro_network_kernel(%arg0: i32, %arg1: i32, %arg2: memref<8x128xf32, #tpu.memory_space<vmem>>, %arg3: memref<8x128x128xbf16, #tpu.memory_space<vmem>>, %arg4: memref<8x1x128xf32, #tpu.memory_space<vmem>>, %arg5: memref<128x128xbf16, #tpu.memory_space<vmem>>, %arg6: memref<1x128xf32, #tpu.memory_space<vmem>>, %arg7: memref<256x128xbf16, #tpu.memory_space<vmem>>, %arg8: memref<1x128xf32, #tpu.memory_space<vmem>>, %arg9: memref<8x128xf32, #tpu.memory_space<vmem>>, %arg10: memref<8x1x128xf32, #tpu.memory_space<vmem>>, %arg11: memref<8x1x1xf32, #tpu.memory_space<vmem>>) attributes {dimension_semantics = [#tpu.dimension_semantics<parallel>, #tpu.dimension_semantics<arbitrary>], iteration_bounds = array<i64: 2, 2>, scalar_prefetch = 0 : i64, scratch_operands = 2 : i64, tpu.core_type = #tpu.core_type<tc>, window_params = [{transform_indices = @transform_0, window_bounds = array<i64: 8, 128>}, {transform_indices = @transform_1, window_bounds = array<i64: 8, 128, 128>}, {transform_indices = @transform_2, window_bounds = array<i64: 8, 1, 128>}, {pipeline_mode = #tpu.pipeline_mode<synchronous>, transform_indices = @transform_3, window_bounds = array<i64: 128, 128>}, {pipeline_mode = #tpu.pipeline_mode<synchronous>, transform_indices = @transform_4, window_bounds = array<i64: 1, 128>}, {pipeline_mode = #tpu.pipeline_mode<synchronous>, transform_indices = @transform_5, window_bounds = array<i64: 256, 128>}, {pipeline_mode = #tpu.pipeline_mode<synchronous>, transform_indices = @transform_6, window_bounds = array<i64: 1, 128>}, {transform_indices = @transform_7, window_bounds = array<i64: 8, 128>}]} {
    %c0_i32 = arith.constant 0 : i32
    %0 = arith.cmpi eq, %arg1, %c0_i32 : i32
    %1 = arith.extui %0 : i1 to i32
    %c0_i32_0 = arith.constant 0 : i32
    %2 = arith.cmpi ne, %1, %c0_i32_0 : i32
    scf.if %2 {
      %cst_20 = arith.constant 0.000000e+00 : f32
      %18 = vector.broadcast %cst_20 : f32 to vector<8x1x128xf32>
      %c0_21 = arith.constant 0 : index
      %c0_22 = arith.constant 0 : index
      %c0_23 = arith.constant 0 : index
      %19 = vector.load %arg10[%c0_21, %c0_22, %c0_23] : memref<8x1x128xf32, #tpu.memory_space<vmem>>, vector<8x1x128xf32>
      tpu.vector_store %arg10[%c0_21, %c0_22, %c0_23], %18 {strides = array<i32>} : memref<8x1x128xf32, #tpu.memory_space<vmem>>, vector<8x1x128xf32>,
      %cst_24 = arith.constant 0.000000e+00 : f32
      %20 = vector.broadcast %cst_24 : f32 to vector<8x1x1xf32>
      %c0_25 = arith.constant 0 : index
      %c0_26 = arith.constant 0 : index
      %c0_27 = arith.constant 0 : index
      %21 = vector.load %arg11[%c0_25, %c0_26, %c0_27] : memref<8x1x1xf32, #tpu.memory_space<vmem>>, vector<8x1x1xf32>
      tpu.vector_store %arg11[%c0_25, %c0_26, %c0_27], %20 {strides = array<i32>} : memref<8x1x1xf32, #tpu.memory_space<vmem>>, vector<8x1x1xf32>,
    } else {
    }
    %c0 = arith.constant 0 : index
    %c0_1 = arith.constant 0 : index
    %c0_2 = arith.constant 0 : index
    %3 = vector.load %arg3[%c0, %c0_1, %c0_2] : memref<8x128x128xbf16, #tpu.memory_space<vmem>>, vector<8x128x128xbf16>
    %c0_3 = arith.constant 0 : index
    %c0_4 = arith.constant 0 : index
    %c0_5 = arith.constant 0 : index
    %4 = vector.load %arg4[%c0_3, %c0_4, %c0_5] : memref<8x1x128xf32, #tpu.memory_space<vmem>>, vector<8x1x128xf32>
    %5 = arith.truncf %4 : vector<8x1x128xf32> to vector<8x1x128xbf16>
    %c0_6 = arith.constant 0 : index
    %c0_7 = arith.constant 0 : index
    %c0_8 = arith.constant 0 : index
    %6 = vector.load %arg10[%c0_6, %c0_7, %c0_8] : memref<8x1x128xf32, #tpu.memory_space<vmem>>, vector<8x1x128xf32>
    "tpu.trace_start"() <{level = 10 : i32, message = "bqs,bsg->bqg"}> : () -> ()
    %cst = arith.constant dense<0.000000e+00> : vector<8x1x128xf32>
    %7 = tpu.matmul %5, %3, %cst {dimension_numbers = #tpu.dot_dimension_numbers<[2], [1], [1], [2], [0, 0, 0, 1, 1, 2], [0], [0]>} : vector<8x1x128xbf16>, vector<8x128x128xbf16>, vector<8x1x128xf32> -> vector<8x1x128xf32>
    "tpu.trace_stop"() : () -> ()
    %8 = arith.addf %6, %7 : vector<8x1x128xf32>
    %c0_9 = arith.constant 0 : index
    %c0_10 = arith.constant 0 : index
    %c0_11 = arith.constant 0 : index
    %9 = vector.load %arg10[%c0_9, %c0_10, %c0_11] : memref<8x1x128xf32, #tpu.memory_space<vmem>>, vector<8x1x128xf32>
    tpu.vector_store %arg10[%c0_9, %c0_10, %c0_11], %8 {strides = array<i32>} : memref<8x1x128xf32, #tpu.memory_space<vmem>>, vector<8x1x128xf32>,
    %c0_12 = arith.constant 0 : index
    %c0_13 = arith.constant 0 : index
    %c0_14 = arith.constant 0 : index
    %10 = vector.load %arg11[%c0_12, %c0_13, %c0_14] : memref<8x1x1xf32, #tpu.memory_space<vmem>>, vector<8x1x1xf32>
    %cst_15 = arith.constant dense<0.000000e+00> : vector<8x1xf32>
    %11 = vector.multi_reduction <add>, %4, %cst_15 [2] : vector<8x1x128xf32> to vector<8x1xf32>
    %12 = vector.shape_cast %11 : vector<8x1xf32> to vector<8x1x1xf32>
    %13 = arith.addf %10, %12 : vector<8x1x1xf32>
    %c0_16 = arith.constant 0 : index
    %c0_17 = arith.constant 0 : index
    %c0_18 = arith.constant 0 : index
    %14 = vector.load %arg11[%c0_16, %c0_17, %c0_18] : memref<8x1x1xf32, #tpu.memory_space<vmem>>, vector<8x1x1xf32>
    tpu.vector_store %arg11[%c0_16, %c0_17, %c0_18], %13 {strides = array<i32>} : memref<8x1x1xf32, #tpu.memory_space<vmem>>, vector<8x1x1xf32>,
    %c1_i32 = arith.constant 1 : i32
    %15 = arith.cmpi eq, %arg1, %c1_i32 : i32
    %16 = arith.extui %15 : i1 to i32
    %c0_i32_19 = arith.constant 0 : i32
    %17 = arith.cmpi ne, %16, %c0_i32_19 : i32
    scf.if %17 {
      %c0_20 = arith.constant 0 : index
      %c0_21 = arith.constant 0 : index
      %18 = vector.load %arg2[%c0_20, %c0_21] : memref<8x128xf32, #tpu.memory_space<vmem>>, vector<8x128xf32>
      %19 = arith.truncf %18 : vector<8x128xf32> to vector<8x128xbf16>
      %c0_22 = arith.constant 0 : index
      %c0_23 = arith.constant 0 : index
      %20 = vector.load %arg5[%c0_22, %c0_23] : memref<128x128xbf16, #tpu.memory_space<vmem>>, vector<128x128xbf16>
      %cst_24 = arith.constant dense<0.000000e+00> : vector<8x128xf32>
      %21 = tpu.matmul %19, %20, %cst_24 {dimension_numbers = #tpu.dot_dimension_numbers<[1], [0], [0], [1], [0, 0, 1, 1], [], []>} : vector<8x128xbf16>, vector<128x128xbf16>, vector<8x128xf32> -> vector<8x128xf32>
      %c0_25 = arith.constant 0 : index
      %c0_26 = arith.constant 0 : index
      %22 = vector.load %arg6[%c0_25, %c0_26] : memref<1x128xf32, #tpu.memory_space<vmem>>, vector<1x128xf32>
      %23 = vector.broadcast %22 : vector<1x128xf32> to vector<8x128xf32>
      %24 = arith.addf %21, %23 : vector<8x128xf32>
      %25 = math.tanh %24 : vector<8x128xf32>
      %c0_27 = arith.constant 0 : index
      %c0_28 = arith.constant 0 : index
      %c0_29 = arith.constant 0 : index
      %26 = vector.load %arg11[%c0_27, %c0_28, %c0_29] : memref<8x1x1xf32, #tpu.memory_space<vmem>>, vector<8x1x1xf32>
      %27 = vector.shape_cast %26 : vector<8x1x1xf32> to vector<8x1xf32>
      %cst_30 = arith.constant 1.000000e+00 : f32
      %28 = vector.broadcast %cst_30 : f32 to vector<8x1xf32>
      %29 = arith.maximumf %27, %28 : vector<8x1xf32>
      %c0_31 = arith.constant 0 : index
      %c0_32 = arith.constant 0 : index
      %c0_33 = arith.constant 0 : index
      %30 = vector.load %arg10[%c0_31, %c0_32, %c0_33] : memref<8x1x128xf32, #tpu.memory_space<vmem>>, vector<8x1x128xf32>
      %31 = vector.shape_cast %30 : vector<8x1x128xf32> to vector<8x128xf32>
      %32 = vector.broadcast %29 : vector<8x1xf32> to vector<8x128xf32>
      %33 = arith.divf %31, %32 : vector<8x128xf32>
      %34 = tpu.concatenate %25, %33 in 1 : vector<8x128xf32>, vector<8x128xf32> -> vector<8x256xf32>
      %35 = arith.truncf %34 : vector<8x256xf32> to vector<8x256xbf16>
      %c0_34 = arith.constant 0 : index
      %c0_35 = arith.constant 0 : index
      %36 = vector.load %arg7[%c0_34, %c0_35] : memref<256x128xbf16, #tpu.memory_space<vmem>>, vector<256x128xbf16>
      %cst_36 = arith.constant dense<0.000000e+00> : vector<8x128xf32>
      %37 = tpu.matmul %35, %36, %cst_36 {dimension_numbers = #tpu.dot_dimension_numbers<[1], [0], [0], [1], [0, 0, 1, 1], [], []>} : vector<8x256xbf16>, vector<256x128xbf16>, vector<8x128xf32> -> vector<8x128xf32>
      %c0_37 = arith.constant 0 : index
      %c0_38 = arith.constant 0 : index
      %38 = vector.load %arg8[%c0_37, %c0_38] : memref<1x128xf32, #tpu.memory_space<vmem>>, vector<1x128xf32>
      %39 = vector.broadcast %38 : vector<1x128xf32> to vector<8x128xf32>
      %40 = arith.addf %37, %39 : vector<8x128xf32>
      %c0_39 = arith.constant 0 : index
      %c0_40 = arith.constant 0 : index
      %41 = vector.load %arg9[%c0_39, %c0_40] : memref<8x128xf32, #tpu.memory_space<vmem>>, vector<8x128xf32>
      tpu.vector_store %arg9[%c0_39, %c0_40], %40 {strides = array<i32>} : memref<8x128xf32, #tpu.memory_space<vmem>>, vector<8x128xf32>,
    } else {
    }
    return
  }
  func.func @transform_0(%arg0: i32, %arg1: i32) -> (i32, i32) {
    %c0_i32 = arith.constant 0 : i32
    %c0_i32_0 = arith.constant 0 : i32
    return %arg0, %c0_i32 : i32, i32
  }
  func.func @transform_1(%arg0: i32, %arg1: i32) -> (i32, i32, i32) {
    %c0_i32 = arith.constant 0 : i32
    %c0_i32_0 = arith.constant 0 : i32
    return %arg0, %arg1, %c0_i32 : i32, i32, i32
  }
  func.func @transform_2(%arg0: i32, %arg1: i32) -> (i32, i32, i32) {
    %c0_i32 = arith.constant 0 : i32
    %c0_i32_0 = arith.constant 0 : i32
    return %arg0, %c0_i32, %arg1 : i32, i32, i32
  }
  func.func @transform_3(%arg0: i32, %arg1: i32) -> (i32, i32) {
    %c0_i32 = arith.constant 0 : i32
    %c0_i32_0 = arith.constant 0 : i32
    %c0_i32_1 = arith.constant 0 : i32
    return %c0_i32, %c0_i32_0 : i32, i32
  }
  func.func @transform_4(%arg0: i32, %arg1: i32) -> (i32, i32) {
    %c0_i32 = arith.constant 0 : i32
    %c0_i32_0 = arith.constant 0 : i32
    %c0_i32_1 = arith.constant 0 : i32
    return %c0_i32, %c0_i32_0 : i32, i32
  }
  func.func @transform_5(%arg0: i32, %arg1: i32) -> (i32, i32) {
    %c0_i32 = arith.constant 0 : i32
    %c0_i32_0 = arith.constant 0 : i32
    %c0_i32_1 = arith.constant 0 : i32
    return %c0_i32, %c0_i32_0 : i32, i32
  }
  func.func @transform_6(%arg0: i32, %arg1: i32) -> (i32, i32) {
    %c0_i32 = arith.constant 0 : i32
    %c0_i32_0 = arith.constant 0 : i32
    %c0_i32_1 = arith.constant 0 : i32
    return %c0_i32, %c0_i32_0 : i32, i32
  }
  func.func @transform_7(%arg0: i32, %arg1: i32) -> (i32, i32) {
    %c0_i32 = arith.constant 0 : i32
    %c0_i32_0 = arith.constant 0 : i32
    return %arg0, %c0_i32 : i32, i32
  }
}

</mosaic_0001>

<bundles_post_ra>
// kernel: tpu_custom_call.1
= control target key start
LH: loop header
LB: loop body
LE: loop exit
PB: predicated region body
PF: predicated region fallthrough
CT: control target
= control target key end

     0   :  { %s3574_s0 = inlined_call_operand.hbm [shape: f32[16,128], index: 0, kind: input, shape index: {}]   ;;  %s3575_s1 = inlined_call_operand.hbm [shape: bf16[16,256,128], index: 1, kind: input, shape index: {}]   ;;  %s3576_s2 = inlined_call_operand.hbm [shape: f32[16,1,256], index: 2, kind: input, shape index: {}]   ;;  %s3577_s3 = inlined_call_operand.hbm [shape: bf16[128,128], index: 3, kind: input, shape index: {}]   ;;  %s3578_s4 = inlined_call_operand.vmem [shape: f32[1,128], index: 4, kind: input, shape index: {}]   ;;  %s3579_s5 = inlined_call_operand.hbm [shape: bf16[256,128], index: 5, kind: input, shape index: {}]   ;;  %s3580_s6 = inlined_call_operand.vmem [shape: f32[1,128], index: 6, kind: input, shape index: {}]   ;;  %s3581_s7 = inlined_call_operand.hbm [shape: f32[16,128], index: 7, kind: output, shape index: {}]  }
   0x1   :  { %3599 = sst [smem:[#allocation31_spill]] %s3574_s0 }
   0x2   :  { %3600 = sst [smem:[#allocation32_spill]] %s3577_s3 }
   0x3   :  { %3601 = sst [smem:[#allocation33_spill]] %s3578_s4 }
   0x4   :  { %3602 = sst [smem:[#allocation34_spill]] %s3580_s6 }
   0x5   :  { %3603 = sst [smem:[#allocation35_spill]] %s3581_s7 }
   0x6   :  { %12 = vsyncpa [#allocation5], 0 }
   0x7   :  { %14 = vsyncpa [#allocation5 + $0x1], 0 }
   0x8   :  { %15 = vsyncpa [#allocation8], 0 }
   0x9   :  { %17 = vsyncpa [#allocation8 + $0x1], 0 }
   0xa   :  { %18 = vsyncpa [#allocation11], 0 }
   0xb   :  { %19 = vsyncpa [#allocation6], 0 }
   0xc   :  { %21 = vsyncpa [#allocation6 + $0x1], 0  ;;  %s2990_s24 = smov 0   ;;  %s2992_s25 = smov 0  }
   0xd   :  { %s2994_s26 = smov 0   ;;  %s2996_s27 = smov 0  }
   0xe   :  { %s2998_s28 = smov 0   ;;  %s3000_s29 = smov 0  }
   0xf   :  { %s3002_s30 = smov 0   ;;  %s3004_s8 = smov 0  }
  0x10   :  { %s3006_s9 = smov 0   ;;  %s3008_s10 = smov 0  }
  0x11   :  { %s3010_s11 = smov 0  }
  0x12 LB: > { %3604 = sst [smem:[#allocation21_spill]] %s2897_s27  ;;  %s3046_s12 = sadd.s32 4294967295, %s2925_s11   ;;  %s2925_s11 = sphi %s3010_s11, %s27_s11   ;;  %s2921_s10 = sphi %s3008_s10, %s3657_s10   ;;  %s2917_s9 = sphi %s3006_s9, %s3656_s9   ;;  %s2913_s8 = sphi %s3004_s8, %s3655_s8   ;;  %s2909_s30 = sphi %s3002_s30, %s3654_s30   ;;  %s2905_s29 = sphi %s3000_s29, %s3653_s29   ;;  %s2901_s28 = sphi %s2998_s28, %s3652_s28   ;;  %s2897_s27 = sphi %s2996_s27, %s3651_s27   ;;  %s2893_s26 = sphi %s2994_s26, %s3650_s26   ;;  %s2889_s25 = sphi %s2992_s25, %s3649_s25   ;;  %s2885_s24 = sphi %s2990_s24, %s3648_s24  }
  0x13   : > { %3605 = sst [smem:[#allocation22_spill]] %s2909_s30  ;;  %s2022_s13 = sadd.s32 4294967294, %s2925_s11  }
  0x14   : > { %3606 = sst [smem:[#allocation23_spill]] %s2913_s8  ;;  %s36_s14 = sadd.s32 1, %s2917_s9 }
  0x15   : > { %s39_s15 = sadd.s32 1, %s2921_s10  ;;  %p37_p0 = scmp.ge.s32.totalorder %s36_s14, 2 }
  0x16   : > { %s46_s16 = sadd.s32 1, %s2905_s29  ;;  %p53_p1 = scmp.ne.s32.totalorder %s2905_s29, %s2901_s28 }
  0x17   : > { %p54_p2 = scmp.eq.s32.totalorder %s2925_s11, 0  ;;  %s3659_s14 = smov (%p37_p0, %s36_s14), 0 }
  0x18   : > { %3607 = sst [smem:[#allocation24_spill]] %s3659_s14  ;;  %s3661_s15 = smov (!%p37_p0, %s39_s15), %s2921_s10 }
  0x19   : > { %p3063_p3 = por %p54_p2, %p53_p1  ;;  %p3584_p4 = scmp.ne.s32.totalorder %s2901_s28, %s2897_s27 }
  0x1a   : > { %p41_p5 = scmp.ge.s32.totalorder %s3661_s15, 2  ;;  %p3592_p6 = scmp.eq.s32.totalorder %s3046_s12, 0 }
  0x1b   : > { %s3608_s17 = scalar_select %p3063_p3, 1, 0 }
  0x1c   : > { %s70_s18 = ssub.s32 %s2917_s9, %s3659_s14  ;;  %s74_s19 = sadd.s32 1, %s2893_s26 }
  0x1d   : > { %s3663_s15 = smov (%p41_p5, %s3661_s15), 0  ;;  %p3080_p7 = por %p3592_p6, %p3584_p4 }
  0x1e   : > { %3609 = sst [smem:[#allocation25_spill]] %s3663_s15  ;;  %p81_p8 = scmp.ne.s32.totalorder %s2893_s26, %s2889_s25 }
  0x1f   : > { %s3610_s20 = scalar_select %p3080_p7, 1, 0 }
  0x20   : > { %s43_s21 = ssub.s32 %s2921_s10, %s3663_s15  ;;  %p87_p9 = scmp.ne.s32.totalorder %s2889_s25, %s2885_s24 }
  0x21   : > { %p44_p10 = scmp.eq.s32.totalorder %s43_s21, 0  ;;  %s71_s22 = sor.u32 %s70_s18, %s43_s21 }
  0x22   : > { %p72_p11 = scmp.eq.s32.totalorder %s71_s22, 0  ;;  %p3092_p12 = por %p81_p8, %p54_p2 }
  0x23   : > { %s3097_s14 = scalar_select %p44_p10, %s2905_s29, %s46_s16  }
  0x24   : > { %s3611_s23 = scalar_select %p3092_p12, 1, 0 }
  0x25   : > { %3612 = sst [smem:[#allocation26_spill]] %s3097_s14  ;;  %p3104_p13 = por %p87_p9, %p3592_p6 }
  0x26   : > { %s3100_s7 = scalar_select %p72_p11, %s2893_s26, %s74_s19  }
  0x27   : > { %s3614_s8 = scalar_select %p3104_p13, 1, 0 }
  0x28   : > { %3613 = sst [smem:[#allocation27_spill]] %s3100_s7  ;;  %p223_p0 = scmp.eq.s32.totalorder %s3046_s12, 3 }
  0x29   : > { %3615 = sst [smem:[#allocation28_spill]] %s3614_s8  ;;  %p229_p5 = scmp.eq.s32.totalorder %s2022_s13, 3 }
  0x2a   : > { %p2023_p4 = scmp.ge.s32.totalorder %s2925_s11, 1  ;;  %p3113_p7 = por %p223_p0, %p53_p1 }
  0x2b   : > { %p236_p2 = scmp.lt.s32.totalorder %s2925_s11, 5  ;;  %p3618_p8 = scmp.ne.s32.totalorder %s2901_s28, %s2897_s27 }
  0x2c   : > { %s3616_s24 = scalar_select %p3113_p7, 1, 0 }
  0x2d   : > { %p3121_p12 = por %p229_p5, %p3618_p8  ;;  %p3125_p10 = pnand %p2023_p4, %p236_p2 }
  0x2e   : > { %3617 = sst [smem:[#allocation29_spill]] %s3616_s24  ;;  %s2927_s19 = smov [#allocation10]  }
  0x2f   : > { %s3619_s16 = scalar_select %p3121_p12, 1, 0 }
  0x30   : > { %s3621_s18 = scalar_select %p3125_p10, 1, 0 }
  0x31   : > { %3620 = sst [smem:[#allocation30_spill]] %s3619_s16  ;;  %s248_s21 = sshll.u32 %s2927_s19, 4  ;;  %s249_s21 = int_to_ptr.vmem [resolvable:$true] %s248_s21 }
  0x32   : > { %p2451_p9 = pneg %p3125_p10  ;;  %s2928_s22 = smov [#allocation12]  }
  0x33   : > { %s264_s15 = sshll.u32 %s2928_s22, 4  ;;  %s3623_s3 = sld [smem:[#allocation32_spill]]  ;;  %s3137_s15 = int_to_ptr.vmem [resolvable:$true] %s264_s15 }
  0x34   : > { %p3133_p1 = pnand %p2451_p9, %p3592_p6 }
  0x36   : > { %p2685_p11 = pneg %p3133_p1 }
  0x39   : > { %s2683_s16 = scalar_lea.hbm %s3623_s3, 1024 }
  0x3a   : > { %p2684_p4 = scmp.ne.s32.totalorder %s3623_s3, %s2683_s16  ;;  %p2690_p2 = scmp.lt.u32.totalorder %s2683_s16, %s3623_s3 }
  0x3c   : > { %p2686_p0 = pnand %p2685_p11, %p2684_p4 }
  0x3e   : > { %p2687_p5 = pneg %p2686_p0 }
  0x40   : > { %p2692_p8 = pnand %p2690_p2, %p2687_p5 }
  0x42   : > { %2695 = shalt.err (!%p2692_p8)
}
  0x43   : > { %s2696_s22 = scalar_lea.vmem %s249_s21, 1024  ;;  %p2704_p7 = scmp.lt.s32.totalorder %s249_s21, %s249_s21 }
  0x44   : > { %p2697_p9 = scmp.ne.s32.totalorder %s249_s21, %s2696_s22  ;;  %p2705_p13 = scmp.lt.s32.totalorder %s2696_s22, %s2696_s22 }
  0x46   : > { %p2699_p6 = pnand %p2697_p9, %p2685_p11  ;;  %p2706_p10 = por %p2705_p13, %p2704_p7 }
  0x48   : > { %p2700_p12 = pneg %p2699_p6 }
  0x4a   : > { %p2707_p3 = pnand %p2706_p10, %p2700_p12 }
  0x4c   : > { %2710 = shalt.err (!%p2707_p3)
}
  0x4d   : > { %s2929_s7 = smov 64   ;;  %s2930_s27 = smov 4  }
  0x4e   : > { %2454 = dma.hbm_to_vmem [thread:$0]  (!%p3133_p1), %s3623_s3, 1024, %s249_s21, [#allocation11], %s2929_s7, %s2929_s7, %s2930_s27  }
  0x4f   : > { %s2711_s19 = scalar_lea.hbm %s3579_s5, 2048 }
  0x50   : > { %p2712_p6 = scmp.ne.s32.totalorder %s3579_s5, %s2711_s19  ;;  %p2718_p12 = scmp.lt.u32.totalorder %s2711_s19, %s3579_s5 }
  0x52   : > { %p2714_p3 = pnand %p2712_p6, %p2685_p11 }
  0x54   : > { %p2715_p7 = pneg %p2714_p3 }
  0x56   : > { %p2720_p13 = pnand %p2718_p12, %p2715_p7 }
  0x58   : > { %2723 = shalt.err (!%p2720_p13)
}
  0x59   : > { %s2724_s21 = scalar_lea.vmem %s3137_s15, 2048  ;;  %p2732_p5 = scmp.lt.s32.totalorder %s3137_s15, %s3137_s15 }
  0x5a   : > { %p2725_p10 = scmp.ne.s32.totalorder %s3137_s15, %s2724_s21  ;;  %p2733_p2 = scmp.lt.s32.totalorder %s2724_s21, %s2724_s21 }
  0x5c   : > { %p2727_p4 = pnand %p2725_p10, %p2685_p11  ;;  %p2734_p8 = por %p2733_p2, %p2732_p5 }
  0x5e   : > { %p2728_p0 = pneg %p2727_p4 }
  0x60   : > { %p2735_p9 = pnand %p2734_p8, %p2728_p0 }
  0x62   : > { %2738 = shalt.err (!%p2735_p9)
}
  0x63   : > { %2457 = dma.hbm_to_vmem [thread:$0]  (!%p3133_p1), %s3579_s5, 2048, %s3137_s15, [#allocation11], %s2929_s7, %s2929_s7, %s2930_s27  }
  0x64   : > { %p2026_p6 = scmp.ge.s32.totalorder %s2925_s11, 4 }
  0x65   : > { %s281_s8 = sand.u32 (!%p2026_p6), 1, %s2905_s29   ;;  %s2028_s6 = sshll.u32 (!%p2026_p6), %s2921_s10, 7 }
  0x66   : > { %277 = sbr.rel (%p2026_p6) target bundleno = 174 (0xae), region = 32  ;;  %s2027_s14 = sshll.u32 (!%p2026_p6), %s281_s8, 3 }
  0x67   : > { %s3624_s0 = sld [smem:[#allocation31_spill]] (!%p2026_p6)  ;;  %s285_s13 = scalar_lea.vmem (!%p2026_p6), [#allocation4], %s2027_s14 }
  0x68   : > { %s292_s15 = sshll.u32 (!%p2026_p6), %s285_s13, 4  ;;  %s282_s7 = scalar_lea.sflag (!%p2026_p6), [#allocation5], %s281_s8  ;;  %s293_s15 = int_to_ptr.vmem [resolvable:$true] %s292_s15 }
  0x69   : > { %p3625_p11 = scmp.ne.s32.totalorder (!%p2026_p6), %s3608_s17, 0 }
  0x6d   : > { %s3192_s19 = scalar_lea.hbm %s3624_s0, %s2028_s6  ;;  %s2743_s4 = scalar_lea.hbm %s3624_s0, 256 }
  0x6e   : > { %s2739_s27 = scalar_lea.hbm %s3192_s19, 128  ;;  %p2744_p12 = scmp.lt.u32.totalorder %s3192_s19, %s3624_s0 }
  0x6f   : > { %p2740_p1 = scmp.ne.s32.totalorder %s3192_s19, %s2739_s27  ;;  %p2745_p13 = scmp.lt.u32.totalorder %s2743_s4, %s2739_s27 }
  0x70   : > { %p2747_p4 = scmp.lt.u32.totalorder %s2739_s27, %s3192_s19 }
  0x71   : > { %p2741_p3 = pnand %p2740_p1, %p3625_p11  ;;  %p2746_p10 = por %p2745_p13, %p2744_p12 }
  0x73   : > { %p2742_p7 = pneg %p2741_p3  ;;  %p2748_p0 = por %p2747_p4, %p2746_p10 }
  0x75   : > { %p2749_p5 = pnand %p2748_p0, %p2742_p7 }
  0x77   : > { %2752 = shalt.err (!%p2749_p5)
}
  0x78   : > { %s2753_s8 = scalar_lea.vmem %s293_s15, 128  ;;  %s2931_s14 = smov [#allocation4]  }
  0x79   : > { %p2754_p2 = scmp.ne.s32.totalorder %s293_s15, %s2753_s8  ;;  %s2757_s24 = sshll.u32 %s2931_s14, 4  ;;  %s2758_s24 = int_to_ptr.vmem [resolvable:$false] %s2757_s24 }
  0x7a   : > { %s2759_s16 = scalar_lea.vmem %s2758_s24, 256  ;;  %p2760_p6 = scmp.lt.s32.totalorder %s293_s15, %s2758_s24 }
  0x7b   : > { %p2755_p8 = pnand %p2754_p2, %p3625_p11  ;;  %p2761_p1 = scmp.lt.s32.totalorder %s2759_s16, %s2753_s8 }
  0x7d   : > { %p2756_p9 = pneg %p2755_p8  ;;  %p2762_p3 = por %p2761_p1, %p2760_p6 }
  0x7f   : > { %p2763_p12 = pnand %p2762_p3, %p2756_p9 }
  0x81   : > { %2766 = shalt.err (!%p2763_p12)
}
  0x82   : > { %2432 = dma.hbm_to_vmem [thread:$0]  (%p3625_p11), %s3192_s19, 128, %s293_s15, %s282_s7  }
  0x83   : > { %s301_s13 = sand.u32 1, %s2893_s26   ;;  %s2031_s22 = sshll.u32 %s2917_s9, 4 }
  0x84   : > { %s2029_s27 = sshll.u32 %s301_s13, 9  ;;  %s2143_s21 = sshll.u32 %s2921_s10, 8 }
  0x85   : > { %s299_s4 = sand.u32 1, %s2925_s11   ;;  %s310_s17 = sadd.s32 %s2143_s21, %s2031_s22 }
  0x86   : > { %s303_s30 = scalar_lea.vmem [#allocation7], %s2029_s27  ;;  %s2033_s15 = sshll.u32 %s310_s17, 6 }
  0x87   : > { %s325_s19 = sshll.u32 %s303_s30, 4  ;;  %s2932_s7 = smov 2048   ;;  %s326_s19 = int_to_ptr.vmem [resolvable:$true] %s325_s19 }
  0x88   : > { %p3626_p11 = scmp.ne.s32.totalorder %s3611_s23, 0  ;;  %s2933_s14 = smov 1024  }
  0x89   : > { %s2934_s24 = smov 16   ;;  %s2935_s16 = smov 64  }
  0x8a   : > { %2434 = sst [smem:[#allocation15]] (%p3626_p11), %s2932_s7  ;;  %s2936_s27 = smov 4  }
  0x8b   : > { %s2433_s6 = scalar_select %p3626_p11, [#allocation0], [#allocation16] }
  0x8c   : > { %2435 = sst [smem:[#allocation15 + $0x1]] (%p3626_p11), %s2933_s14  ;;  %s312_s17 = scalar_lea.hbm %s3575_s1, %s2033_s15 }
  0x8d   : > { %s317_s8 = sld [smem:[%s2433_s6]]   ;;  %s3234_s6 = scalar_lea.sflag [#allocation8], %s299_s4 }
  0x8e   : > { %2436 = sst [smem:[#allocation15 + $0x2]] (%p3626_p11), %s2934_s24  ;;  %s2937_s14 = smov [#allocation14]  }
  0x8f   : > { %2437 = sst [smem:[#allocation15 + $0x3]] (%p3626_p11), %s2935_s16  ;;  %s2036_s24 = sshll.u32 %s301_s13, 3 }
  0x90   : > { %2438 = sst [smem:[#allocation15 + $0x4]] (%p3626_p11), %s2935_s16  ;;  %s2144_s16 = sshll.u32 %s2921_s10, 4 }
  0x91   : > { %2439 = sst [smem:[#allocation15 + $0x5]] (%p3626_p11), %s2936_s27  ;;  %s358_s27 = sadd.s32 %s2917_s9, %s2144_s16 }
  0x92   : > { %s2039_s0 = sshll.u32 %s358_s27, 4  ;;  %s352_s3 = scalar_lea.vmem [#allocation9], %s2036_s24 }
  0x93   : > { %s2034_s30 = sshll.u32 %s317_s8, 26  ;;  %s361_s22 = sshll.u32 %s352_s3, 4  ;;  %s3248_s22 = int_to_ptr.vmem [resolvable:$true] %s361_s22 }
  0x94   : > { %s2035_s7 = sadd.s32 134217728, %s2034_s30  ;;  %s3246_s4 = scalar_lea.hbm %s3576_s2, %s2039_s0 }
  0x95   : > { %2440 = dma.general (%p3626_p11), %s312_s17, 8192, %s326_s19, %s3234_s6, %s2937_s14, [#allocation15], %s2035_s7, 0  }
  0x96   : > { %s2767_s19 = scalar_lea.hbm %s3246_s4, 128  ;;  %s2771_s3 = scalar_lea.hbm %s3576_s2, 512 }
  0x97   : > { %p2768_p7 = scmp.ne.s32.totalorder %s3246_s4, %s2767_s19  ;;  %p2772_p4 = scmp.lt.u32.totalorder %s3246_s4, %s3576_s2 }
  0x98   : > { %p2773_p0 = scmp.lt.u32.totalorder %s2771_s3, %s2767_s19  ;;  %p2775_p2 = scmp.lt.u32.totalorder %s2767_s19, %s3246_s4 }
  0x99   : > { %p2769_p13 = pnand %p2768_p7, %p3626_p11 }
  0x9a   : > { %p2774_p5 = por %p2773_p0, %p2772_p4 }
  0x9b   : > { %p2770_p10 = pneg %p2769_p13 }
  0x9c   : > { %p2776_p8 = por %p2775_p2, %p2774_p5 }
  0x9e   : > { %p2777_p9 = pnand %p2776_p8, %p2770_p10 }
  0xa0   : > { %2780 = shalt.err (!%p2777_p9)
}
  0xa1   : > { %s2781_s0 = scalar_lea.vmem %s3248_s22, 128  ;;  %s2938_s7 = smov [#allocation9]  }
  0xa2   : > { %p2782_p6 = scmp.ne.s32.totalorder %s3248_s22, %s2781_s0  ;;  %s2785_s14 = sshll.u32 %s2938_s7, 4  ;;  %s2786_s14 = int_to_ptr.vmem [resolvable:$false] %s2785_s14 }
  0xa3   : > { %s2787_s24 = scalar_lea.vmem %s2786_s14, 256  ;;  %p2788_p12 = scmp.lt.s32.totalorder %s3248_s22, %s2786_s14 }
  0xa4   : > { %p2783_p1 = pnand %p2782_p6, %p3626_p11  ;;  %p2789_p7 = scmp.lt.s32.totalorder %s2787_s24, %s2781_s0 }
  0xa6   : > { %p2784_p3 = pneg %p2783_p1  ;;  %p2790_p13 = por %p2789_p7, %p2788_p12 }
  0xa8   : > { %p2791_p4 = pnand %p2790_p13, %p2784_p3 }
  0xaa   : > { %2794 = shalt.err (!%p2791_p4)
}
  0xab   : > { %s2939_s16 = smov 32   ;;  %s2940_s27 = smov 16  }
  0xac   : > { %s2941_s15 = smov 1  }
  0xad   : > { %2441 = dma.hbm_to_vmem [thread:$0]  (%p3626_p11), %s3246_s4, 128, %s3248_s22, %s3234_s6, %s2939_s16, %s2940_s27, %s2941_s15  }
  0xae PF: > { %p3627_p10 = scmp.ne.s32.totalorder %s3621_s18, 0 }
  0xaf   : > { %s3275_s8 = sand.u32 (!%p3627_p10), 1, %s2901_s28   ;;  %p3628_p0 = scmp.ne.s32.totalorder (!%p3627_p10), %s3610_s20, 0 }
  0xb0   : > { %373 = sbr.rel (%p3627_p10) target bundleno = 963 (0x3c3), region = 48  ;;  %s2041_s19 = sshll.u32 (!%p3627_p10), %s3275_s8, 3 }
  0xb1   : > { %s376_s13 = scalar_lea.sflag (!%p3627_p10), [#allocation5], %s3275_s8  ;;  %s3279_s21 = scalar_lea.vmem (!%p3627_p10), [#allocation4], %s2041_s19 }
  0xb7   : > { %2868 = dma.done.wait (%p3628_p0), %s376_s13, 128  }
  0xb8   : > { %2870 = vsyncadd (%p3628_p0), %s376_s13, 4294967168  ;;  %s3629_s23 = sld [smem:[#allocation28_spill]]  ;;  %s384_s18 = sand.u32 1, %s3046_s12  }
  0xb9   : > { %s386_s6 = sand.u32 1, %s2889_s25   ;;  %s385_s4 = scalar_lea.sflag [#allocation8], %s384_s18 }
  0xba   : > { %s2042_s22 = sshll.u32 %s386_s6, 9 }
  0xbb   : > { %s3287_s3 = scalar_lea.vmem [#allocation7], %s2042_s22 }
  0xbe   : > { %p3630_p11 = scmp.ne.s32.totalorder %s3629_s23, 0 }
  0xc0   : > { %2872 = dma.done.wait (%p3630_p11), %s385_s4, 8320  }
  0xc1   : > { %2874 = vsyncadd (%p3630_p11), %s385_s4, 4294958976  ;;  %s2043_s17 = sshll.u32 %s386_s6, 3  ;;  %p3631_p5 = scmp.eq.s32.totalorder %s3046_s12, 0 }
  0xc2   : > { %s3293_s30 = scalar_lea.vmem [#allocation9], %s2043_s17 }
  0xc3   : > { %2876 = dma.done.wait (%p3631_p5), [#allocation11], 3072   ;;  %p3632_p2 = pmov %p3631_p5 }
  0xc4   : > { %s3299_s20 = scalar_lea.vmem [#allocation13], %s2041_s19  ;;  %s3633_s0 = sld [smem:[#allocation22_spill]] }
  0xc5   : > { %2878 = vsyncadd (%p3632_p2), [#allocation11], 4294964224 }
  0xca   : > { %p2047_p8 = scmp.ne.s32.totalorder %s3633_s0, 0 }
  0xcb   : > { %vm462_vm0 = vcmask (!%p2047_p8), 0   ;;  %v2942_v0 = vmov (!%p2047_p8), 0.0  }
  0xcc   : > { %453 = sbr.rel (%p2047_p8) target bundleno = 212 (0xd4), region = 72  ;;  %454 = vst [vmem:[#allocation2] sm:$0x1] (!%p2047_p8), %v2942_v0  ;;  %455 = vst [vmem:[#allocation2 + $0x1] sm:$0x1] (!%p2047_p8), %v2942_v0 }
  0xcd   : > { %456 = vst [vmem:[#allocation2 + $0x2] sm:$0x1] (!%p2047_p8), %v2942_v0  ;;  %457 = vst [vmem:[#allocation2 + $0x3] sm:$0x1] (!%p2047_p8), %v2942_v0 }
  0xce   : > { %458 = vst [vmem:[#allocation2 + $0x4] sm:$0x1] (!%p2047_p8), %v2942_v0  ;;  %459 = vst [vmem:[#allocation2 + $0x5] sm:$0x1] (!%p2047_p8), %v2942_v0 }
  0xcf   : > { %460 = vst [vmem:[#allocation2 + $0x6] sm:$0x1] (!%p2047_p8), %v2942_v0  ;;  %461 = vst [vmem:[#allocation2 + $0x7] sm:$0x1] (!%p2047_p8), %v2942_v0 }
  0xd0   : > { %463 = vst.msk [vmem:[#allocation3] sm:$0x1] (!%p2047_p8), %vm462_vm0, %v2942_v0  ;;  %464 = vst.msk [vmem:[#allocation3 + $0x1] sm:$0x1] (!%p2047_p8), %vm462_vm0, %v2942_v0 }
  0xd1   : > { %465 = vst.msk [vmem:[#allocation3 + $0x2] sm:$0x1] (!%p2047_p8), %vm462_vm0, %v2942_v0  ;;  %466 = vst.msk [vmem:[#allocation3 + $0x3] sm:$0x1] (!%p2047_p8), %vm462_vm0, %v2942_v0 }
  0xd2   : > { %467 = vst.msk [vmem:[#allocation3 + $0x4] sm:$0x1] (!%p2047_p8), %vm462_vm0, %v2942_v0  ;;  %468 = vst.msk [vmem:[#allocation3 + $0x5] sm:$0x1] (!%p2047_p8), %vm462_vm0, %v2942_v0 }
  0xd3   : > { %469 = vst.msk [vmem:[#allocation3 + $0x6] sm:$0x1] %vm462_vm0, %v2942_v0  ;;  %470 = vst.msk [vmem:[#allocation3 + $0x7] sm:$0x1] %vm462_vm0, %v2942_v0 }
  0xd4 PF: > { %v2575_v1 = vld [vmem:[%s3287_s3] sm:$0xff]   ;;  %v2943_v2 = vmov 0.0   ;;  %v2577_v4 = vld [vmem:[%s3287_s3 + $0x8] sm:$0xff]   ;;  %vm2944_vm1 = vmmov 0   ;;  %v2579_v6 = vld [vmem:[%s3287_s3 + $0x10] sm:$0xff]   ;;  %vm1351_vm2 = vcmask 1040384  }
  0xd5   : > { %2248 = vmatprep.subr.bf16.mxu0 %v2943_v2  ;;  %2268 = vmatprep.subr.bf16.mxu1 %v2943_v2  ;;  %v2576_v3 = vld [vmem:[%s3287_s3 + $0x40] sm:$0xff]   ;;  %v2578_v5 = vld [vmem:[%s3287_s3 + $0x48] sm:$0xff]   ;;  %v2580_v7 = vld [vmem:[%s3287_s3 + $0x50] sm:$0xff]   ;;  %vm1384_vm3 = vcmask 0   ;;  %s3634_s12 = sld [smem:[#allocation22_spill]] }
  0xd6   : > { %2249 = vmatpush3.bf16.msra.mxu0 %v2575_v1  ;;  %2264 = vmatprep.mubr.msk.bf16.mxu0 %vm2944_vm1, %v2943_v2  ;;  %v2581_v8 = vld [vmem:[%s3287_s3 + $0x18] sm:$0xff]   ;;  %v2583_v10 = vld [vmem:[%s3287_s3 + $0x20] sm:$0xff]   ;;  %v2585_v13 = vld [vmem:[%s3287_s3 + $0x28] sm:$0xff]  }
  0xd7   : > { %2269 = vmatpush3.bf16.msra.mxu1 %v2576_v3  ;;  %2250 = vmatprep.subr.bf16.mxu0 %v2943_v2  ;;  %v2582_v9 = vld [vmem:[%s3287_s3 + $0x58] sm:$0xff]   ;;  %v2584_v11 = vld [vmem:[%s3287_s3 + $0x60] sm:$0xff]   ;;  %v2586_v16 = vld [vmem:[%s3287_s3 + $0x68] sm:$0xff]  }
  0xd8   : > { %2270 = vmatprep.subr.bf16.mxu1 %v2943_v2  ;;  %2284 = vmatprep.mubr.msk.bf16.mxu1 %vm2944_vm1, %v2943_v2  ;;  %v599_v12 = vld [vmem:[%s3293_s30] sm:$0x1]  ;;  %v600_v15 = vld [vmem:[%s3293_s30 + $0x1] sm:$0x1]  ;;  %v2587_v18 = vld [vmem:[%s3287_s3 + $0x30] sm:$0xff]  }
  0xd9   : > { %v1352_v14 = vsel %vm1351_vm2, %v599_v12, 0.0  ;;  %v1355_v17 = vsel %vm1351_vm2, %v600_v15, 0.0  ;;  %v2588_v19 = vld [vmem:[%s3287_s3 + $0x70] sm:$0xff]   ;;  %v2589_v20 = vld [vmem:[%s3287_s3 + $0x38] sm:$0xff]   ;;  %v607_v22 = vpack.c.bf16 %v599_v12, %v599_v12  ;;  %v608_v23 = vpack.c.bf16 %v600_v15, %v600_v15  ;;  %v2591_v24 = vld [vmem:[%s3287_s3 + $0x80] sm:$0xff]  }
  0xda   : > { %2251 = vmatpush3.bf16.msra.mxu0 %v2577_v4  ;;  %1353 = vadd.xlane.f32.xlu0 %v1352_v14  ;;  %v2590_v21 = vld [vmem:[%s3287_s3 + $0x78] sm:$0xff]   ;;  %v2592_v25 = vld [vmem:[%s3287_s3 + $0xc0] sm:$0xff]   ;;  %v2593_v27 = vld [vmem:[%s3287_s3 + $0x88] sm:$0xff]  }
  0xdb   : > { %2271 = vmatpush3.bf16.msra.mxu1 %v2578_v5  ;;  %2252 = vmatprep.subr.bf16.mxu0 %v2943_v2  ;;  %v3355_v26 = vld [vmem:[%s3293_s30 + $0x2] sm:$0x1]  ;;  %v602_v30 = vld [vmem:[%s3293_s30 + $0x3] sm:$0x1]  ;;  %v2595_v31 = vld [vmem:[%s3287_s3 + $0x90] sm:$0xff]   ;;  %p2112_p9 = scmp.ne.s32.totalorder %s3634_s12, 1 }
  0xdc   : > { %2272 = vmatprep.subr.bf16.mxu1 %v2943_v2  ;;  %v1358_v28 = vsel %vm1351_vm2, %v3355_v26, 0.0  ;;  %v2594_v29 = vld [vmem:[%s3287_s3 + $0xc8] sm:$0xff]   ;;  %v1361_v32 = vsel %vm1351_vm2, %v602_v30, 0.0  ;;  %v2596_v33 = vld [vmem:[%s3287_s3 + $0xd0] sm:$0xff]   ;;  %v2597_v34 = vld [vmem:[%s3287_s3 + $0x98] sm:$0xff]   ;;  %v609_v48 = vpack.c.bf16 %v3355_v26, %v3355_v26  ;;  %v610_v49 = vpack.c.bf16 %v602_v30, %v602_v30  ;;  %s3635_s24 = sld [smem:[#allocation33_spill]] (!%p2112_p9) }
  0xdd   : > { %1359 = vadd.xlane.f32.xlu1 %v1358_v28  ;;  %v2598_v35 = vld [vmem:[%s3287_s3 + $0xd8] sm:$0xff]   ;;  %v2599_v36 = vld [vmem:[%s3287_s3 + $0xa0] sm:$0xff]   ;;  %v2601_v40 = vld [vmem:[%s3287_s3 + $0xa8] sm:$0xff]   ;;  %vm2946_vm4 = vmmov (!%p2112_p9), 0   ;;  %s3636_s15 = sld [smem:[#allocation34_spill]] (!%p2112_p9) }
  0xde   : > { %2253 = vmatpush3.bf16.msra.mxu0 %v2579_v6  ;;  %1356 = vadd.xlane.f32.xlu0 %v1355_v17  ;;  %v2600_v37 = vld [vmem:[%s3287_s3 + $0xe0] sm:$0xff]   ;;  %v2602_v42 = vld [vmem:[%s3287_s3 + $0xe8] sm:$0xff]   ;;  %v2603_v44 = vld [vmem:[%s3287_s3 + $0xb0] sm:$0xff]  }
  0xdf   : > { %2273 = vmatpush3.bf16.msra.mxu1 %v2580_v7  ;;  %2254 = vmatprep.subr.bf16.mxu0 %v2943_v2  ;;  %v3382_v38 = vld [vmem:[%s3293_s30 + $0x4] sm:$0x1]  ;;  %v3385_v39 = vld [vmem:[%s3293_s30 + $0x5] sm:$0x1]  ;;  %v2604_v45 = vld [vmem:[%s3287_s3 + $0xf0] sm:$0xff]  }
  0xe0   : > { %2274 = vmatprep.subr.bf16.mxu1 %v2943_v2  ;;  %v1367_v41 = vsel %vm1351_vm2, %v3385_v39, 0.0  ;;  %v1364_v43 = vsel %vm1351_vm2, %v3382_v38, 0.0  ;;  %v2605_v46 = vld [vmem:[%s3287_s3 + $0xb8] sm:$0xff]   ;;  %v2607_v50 = vld [vmem:[%s3287_s3 + $0x100] sm:$0xff]   ;;  %v2609_v52 = vld [vmem:[%s3287_s3 + $0x108] sm:$0xff]   ;;  %v611_v7 = vpack.c.bf16 %v3382_v38, %v3382_v38 }
  0xe1   : > { %1362 = vadd.xlane.f32.xlu1 %v1361_v32  ;;  %v2606_v47 = vld [vmem:[%s3287_s3 + $0xf8] sm:$0xff]   ;;  %v2608_v51 = vld [vmem:[%s3287_s3 + $0x140] sm:$0xff]   ;;  %v2610_v55 = vld [vmem:[%s3287_s3 + $0x148] sm:$0xff]  }
  0xe2   : > { %2255 = vmatpush3.bf16.msra.mxu0 %v2581_v8  ;;  %1365 = vadd.xlane.f32.xlu0 %v1364_v43  ;;  %v3411_v53 = vld [vmem:[%s3293_s30 + $0x6] sm:$0x1]  ;;  %v3414_v54 = vld [vmem:[%s3293_s30 + $0x7] sm:$0x1]  ;;  %v2611_v58 = vld [vmem:[%s3287_s3 + $0x110] sm:$0xff]   ;;  %v612_v8 = vpack.c.bf16 %v3385_v39, %v3385_v39 }
  0xe3   : > { %2275 = vmatpush3.bf16.msra.mxu1 %v2582_v9  ;;  %2256 = vmatprep.subr.bf16.mxu0 %v2943_v2  ;;  %v1373_v56 = vsel %vm1351_vm2, %v3414_v54, 0.0  ;;  %v1370_v57 = vsel %vm1351_vm2, %v3411_v53, 0.0  ;;  %v2612_v59 = vld [vmem:[%s3287_s3 + $0x150] sm:$0xff]   ;;  %v2613_v60 = vld [vmem:[%s3287_s3 + $0x118] sm:$0xff]   ;;  %v2615_v62 = vld [vmem:[%s3287_s3 + $0x120] sm:$0xff]   ;;  %v614_v26 = vpack.c.bf16 %v3414_v54, %v3414_v54 }
  0xe4   : > { %2276 = vmatprep.subr.bf16.mxu1 %v2943_v2  ;;  %v2614_v61 = vld [vmem:[%s3287_s3 + $0x158] sm:$0xff]   ;;  %v2616_v63 = vld [vmem:[%s3287_s3 + $0x160] sm:$0xff]   ;;  %v2617_v0 = vld [vmem:[%s3287_s3 + $0x128] sm:$0xff]  }
  0xe5   : > { %1368 = vadd.xlane.f32.xlu1 %v1367_v41  ;;  %v2618_v1 = vld [vmem:[%s3287_s3 + $0x168] sm:$0xff]   ;;  %v2619_v3 = vld [vmem:[%s3287_s3 + $0x130] sm:$0xff]   ;;  %v2621_v5 = vld [vmem:[%s3287_s3 + $0x138] sm:$0xff]  }
  0xe6   : > { %2257 = vmatpush3.bf16.msra.mxu0 %v2583_v10  ;;  %1371 = vadd.xlane.f32.xlu0 %v1370_v57  ;;  %v2620_v4 = vld [vmem:[%s3287_s3 + $0x170] sm:$0xff]   ;;  %v2622_v6 = vld [vmem:[%s3287_s3 + $0x178] sm:$0xff]   ;;  %v2623_v9 = vld [vmem:[%s3287_s3 + $0x180] sm:$0xff]  }
  0xe7   : > { %2277 = vmatpush3.bf16.msra.mxu1 %v2584_v11  ;;  %2258 = vmatprep.subr.bf16.mxu0 %v2943_v2  ;;  %v2624_v10 = vld [vmem:[%s3287_s3 + $0x1c0] sm:$0xff]   ;;  %v2625_v11 = vld [vmem:[%s3287_s3 + $0x188] sm:$0xff]   ;;  %v2628_v14 = vld [vmem:[%s3287_s3 + $0x1d0] sm:$0xff]  }
  0xe8   : > { %2278 = vmatprep.subr.bf16.mxu1 %v2943_v2  ;;  %v2626_v12 = vld [vmem:[%s3287_s3 + $0x1c8] sm:$0xff]   ;;  %v2629_v15 = vld [vmem:[%s3287_s3 + $0x198] sm:$0xff]   ;;  %v2631_v17 = vld [vmem:[%s3287_s3 + $0x1a0] sm:$0xff]  }
  0xe9   : > { %1374 = vadd.xlane.f32.xlu1 %v1373_v56  ;;  %v1348_v38 = vld [vmem:[#allocation3 + $0x5] sm:$0x1]  ;;  %v1347_v39 = vld [vmem:[#allocation3 + $0x4] sm:$0x1] }
  0xea   : > { %2259 = vmatpush3.bf16.msra.mxu0 %v2585_v13  ;;  %v2627_v13 = vld [vmem:[%s3287_s3 + $0x190] sm:$0xff]  }
  0xeb   : > { %2279 = vmatpush3.bf16.msra.mxu1 %v2586_v16  ;;  %2260 = vmatprep.subr.bf16.mxu0 %v2943_v2  ;;  %v2630_v16 = vld [vmem:[%s3287_s3 + $0x1d8] sm:$0xff]  }
  0xec   : > { %2280 = vmatprep.subr.bf16.mxu1 %v2943_v2 }
  0xee   : > { %2261 = vmatpush3.bf16.msra.mxu0 %v2587_v18  ;;  %v2632_v18 = vld [vmem:[%s3287_s3 + $0x1e0] sm:$0xff]  }
  0xef   : > { %2281 = vmatpush3.bf16.msra.mxu1 %v2588_v19  ;;  %2262 = vmatprep.subr.bf16.mxu0 %v2943_v2  ;;  %v2633_v19 = vld [vmem:[%s3287_s3 + $0x1a8] sm:$0xff]  }
  0xf0   : > { %2282 = vmatprep.subr.bf16.mxu1 %v2943_v2 }
  0xf2   : > { %2263 = vmatpush3.bf16.msra.mxu0 %v2589_v20  ;;  %v2634_v20 = vld [vmem:[%s3287_s3 + $0x1e8] sm:$0xff]  }
  0xf3   : > { %2283 = vmatpush3.bf16.msra.mxu1 %v2590_v21  ;;  %2288 = vmatprep.subr.bf16.mxu0 %v2943_v2  ;;  %v2635_v21 = vld [vmem:[%s3287_s3 + $0x1b0] sm:$0xff]  }
  0xf4   : > { %2308 = vmatprep.subr.bf16.mxu1 %v2943_v2 }
  0xf5   : > { %2265 = vmatmul.mubr.bf16.vlgmr.msra.gmra.mrb[0].mxu0 %v607_v22  ;;  %v2636_v22 = vld [vmem:[%s3287_s3 + $0x1f0] sm:$0xff]  }
  0xf6   : > { %2285 = vmatmul.mubr.bf16.vlgmr.msra.gmra.mrb[0].mxu1 %v608_v23  ;;  %2289 = vmatpush3.bf16.msra.mxu0 %v2591_v24  ;;  %v2637_v23 = vld [vmem:[%s3287_s3 + $0x1b8] sm:$0xff]  }
  0xf7   : > { %2309 = vmatpush3.bf16.msra.mxu1 %v2592_v25  ;;  %2290 = vmatprep.subr.bf16.mxu0 %v2943_v2  ;;  %v2638_v24 = vld [vmem:[%s3287_s3 + $0x1f8] sm:$0xff]   ;;  %v613_v25 = vpack.c.bf16 %v3411_v53, %v3411_v53 }
  0xf8   : > { %2310 = vmatprep.subr.bf16.mxu1 %v2943_v2  ;;  %2304 = vmatprep.mubr.msk.bf16.mxu0 %vm2944_vm1, %v2943_v2 }
  0xf9   : > { %2324 = vmatprep.mubr.msk.bf16.mxu1 %vm2944_vm1, %v2943_v2 }
  0xfa   : > { %2291 = vmatpush3.bf16.msra.mxu0 %v2593_v27  ;;  %v1345_v27 = vld [vmem:[#allocation3 + $0x2] sm:$0x1] }
  0xfb   : > { %2311 = vmatpush3.bf16.msra.mxu1 %v2594_v29  ;;  %2292 = vmatprep.subr.bf16.mxu0 %v2943_v2  ;;  %v1343_v29 = vld [vmem:[#allocation3] sm:$0x1] }
  0xfc   : > { %2312 = vmatprep.subr.bf16.mxu1 %v2943_v2 }
  0xfe   : > { %2293 = vmatpush3.bf16.msra.mxu0 %v2595_v31 }
  0xff   : > { %2313 = vmatpush3.bf16.msra.mxu1 %v2596_v33  ;;  %2294 = vmatprep.subr.bf16.mxu0 %v2943_v2  ;;  %v1346_v33 = vld [vmem:[#allocation3 + $0x3] sm:$0x1] }
 0x100   : > { %2314 = vmatprep.subr.bf16.mxu1 %v2943_v2 }
 0x102   : > { %2295 = vmatpush3.bf16.msra.mxu0 %v2597_v34  ;;  %v1344_v34 = vld [vmem:[#allocation3 + $0x1] sm:$0x1] }
 0x103   : > { %2315 = vmatpush3.bf16.msra.mxu1 %v2598_v35  ;;  %2296 = vmatprep.subr.bf16.mxu0 %v2943_v2 }
 0x104   : > { %2316 = vmatprep.subr.bf16.mxu1 %v2943_v2 }
 0x106   : > { %2297 = vmatpush3.bf16.msra.mxu0 %v2599_v36 }
 0x107   : > { %2317 = vmatpush3.bf16.msra.mxu1 %v2600_v37  ;;  %2298 = vmatprep.subr.bf16.mxu0 %v2943_v2 }
 0x108   : > { %2318 = vmatprep.subr.bf16.mxu1 %v2943_v2 }
 0x10a   : > { %2299 = vmatpush3.bf16.msra.mxu0 %v2601_v40 }
 0x10b   : > { %2319 = vmatpush3.bf16.msra.mxu1 %v2602_v42  ;;  %2300 = vmatprep.subr.bf16.mxu0 %v2943_v2 }
 0x10c   : > { %2320 = vmatprep.subr.bf16.mxu1 %v2943_v2 }
 0x10e   : > { %2301 = vmatpush3.bf16.msra.mxu0 %v2603_v44  ;;  %v1350_v44 = vld [vmem:[#allocation3 + $0x7] sm:$0x1] }
 0x10f   : > { %2321 = vmatpush3.bf16.msra.mxu1 %v2604_v45  ;;  %2302 = vmatprep.subr.bf16.mxu0 %v2943_v2  ;;  %v1349_v45 = vld [vmem:[#allocation3 + $0x6] sm:$0x1] }
 0x110   : > { %2322 = vmatprep.subr.bf16.mxu1 %v2943_v2 }
 0x112   : > { %2303 = vmatpush3.bf16.msra.mxu0 %v2605_v46 }
 0x113   : > { %2323 = vmatpush3.bf16.msra.mxu1 %v2606_v47  ;;  %2328 = vmatprep.subr.bf16.mxu0 %v2943_v2 }
 0x114   : > { %2348 = vmatprep.subr.bf16.mxu1 %v2943_v2 }
 0x115   : > { %2305 = vmatmul.mubr.bf16.vlgmr.msra.gmra.mrb[4].mxu0 %v609_v48 }
 0x116   : > { %2325 = vmatmul.mubr.bf16.vlgmr.msra.gmra.mrb[4].mxu1 %v610_v49  ;;  %2329 = vmatpush3.bf16.msra.mxu0 %v2607_v50  ;;  %v615_v50 = vld [vmem:[#allocation2] sm:$0x1] }
 0x117   : > { %2349 = vmatpush3.bf16.msra.mxu1 %v2608_v51  ;;  %2330 = vmatprep.subr.bf16.mxu0 %v2943_v2  ;;  %v616_v51 = vld [vmem:[#allocation2 + $0x1] sm:$0x1] }
 0x118   : > { %2350 = vmatprep.subr.bf16.mxu1 %v2943_v2  ;;  %2344 = vmatprep.mubr.msk.bf16.mxu0 %vm2944_vm1, %v2943_v2 }
 0x119   : > { %2364 = vmatprep.mubr.msk.bf16.mxu1 %vm2944_vm1, %v2943_v2 }
 0x11a   : > { %2331 = vmatpush3.bf16.msra.mxu0 %v2609_v52 }
 0x11b   : > { %2351 = vmatpush3.bf16.msra.mxu1 %v2610_v55  ;;  %2332 = vmatprep.subr.bf16.mxu0 %v2943_v2 }
 0x11c   : > { %2352 = vmatprep.subr.bf16.mxu1 %v2943_v2 }
 0x11e   : > { %2333 = vmatpush3.bf16.msra.mxu0 %v2611_v58 }
 0x11f   : > { %2353 = vmatpush3.bf16.msra.mxu1 %v2612_v59  ;;  %2334 = vmatprep.subr.bf16.mxu0 %v2943_v2 }
 0x120   : > { %2354 = vmatprep.subr.bf16.mxu1 %v2943_v2 }
 0x122   : > { %2335 = vmatpush3.bf16.msra.mxu0 %v2613_v60 }
 0x123   : > { %2355 = vmatpush3.bf16.msra.mxu1 %v2614_v61  ;;  %2336 = vmatprep.subr.bf16.mxu0 %v2943_v2 }
 0x124   : > { %2356 = vmatprep.subr.bf16.mxu1 %v2943_v2 }
 0x126   : > { %2337 = vmatpush3.bf16.msra.mxu0 %v2615_v62  ;;  %v617_v62 = vld [vmem:[#allocation2 + $0x2] sm:$0x1] }
 0x127   : > { %2357 = vmatpush3.bf16.msra.mxu1 %v2616_v63  ;;  %2338 = vmatprep.subr.bf16.mxu0 %v2943_v2  ;;  %v618_v63 = vld [vmem:[#allocation2 + $0x3] sm:$0x1] }
 0x128   : > { %2358 = vmatprep.subr.bf16.mxu1 %v2943_v2 }
 0x12a   : > { %2339 = vmatpush3.bf16.msra.mxu0 %v2617_v0 }
 0x12b   : > { %2359 = vmatpush3.bf16.msra.mxu1 %v2618_v1  ;;  %2340 = vmatprep.subr.bf16.mxu0 %v2943_v2 }
 0x12c   : > { %2360 = vmatprep.subr.bf16.mxu1 %v2943_v2 }
 0x12e   : > { %2341 = vmatpush3.bf16.msra.mxu0 %v2619_v3 }
 0x12f   : > { %2361 = vmatpush3.bf16.msra.mxu1 %v2620_v4  ;;  %2342 = vmatprep.subr.bf16.mxu0 %v2943_v2 }
 0x130   : > { %2362 = vmatprep.subr.bf16.mxu1 %v2943_v2 }
 0x132   : > { %2343 = vmatpush3.bf16.msra.mxu0 %v2621_v5 }
 0x133   : > { %2363 = vmatpush3.bf16.msra.mxu1 %v2622_v6  ;;  %2368 = vmatprep.subr.bf16.mxu0 %v2943_v2 }
 0x134   : > { %2388 = vmatprep.subr.bf16.mxu1 %v2943_v2 }
 0x135   : > { %2345 = vmatmul.mubr.bf16.vlgmr.msra.gmra.mrb[8].mxu0 %v611_v7 }
 0x136   : > { %2365 = vmatmul.mubr.bf16.vlgmr.msra.gmra.mrb[8].mxu1 %v612_v8  ;;  %2369 = vmatpush3.bf16.msra.mxu0 %v2623_v9 }
 0x137   : > { %2389 = vmatpush3.bf16.msra.mxu1 %v2624_v10  ;;  %2370 = vmatprep.subr.bf16.mxu0 %v2943_v2 }
 0x138   : > { %2390 = vmatprep.subr.bf16.mxu1 %v2943_v2  ;;  %2384 = vmatprep.mubr.msk.bf16.mxu0 %vm2944_vm1, %v2943_v2 }
 0x139   : > { %2404 = vmatprep.mubr.msk.bf16.mxu1 %vm2944_vm1, %v2943_v2 }
 0x13a   : > { %2371 = vmatpush3.bf16.msra.mxu0 %v2625_v11  ;;  %v619_v11 = vld [vmem:[#allocation2 + $0x4] sm:$0x1] }
 0x13b   : > { %2391 = vmatpush3.bf16.msra.mxu1 %v2626_v12  ;;  %2372 = vmatprep.subr.bf16.mxu0 %v2943_v2  ;;  %v620_v12 = vld [vmem:[#allocation2 + $0x5] sm:$0x1] }
 0x13c   : > { %2392 = vmatprep.subr.bf16.mxu1 %v2943_v2 }
 0x13e   : > { %2373 = vmatpush3.bf16.msra.mxu0 %v2627_v13 }
 0x13f   : > { %2393 = vmatpush3.bf16.msra.mxu1 %v2628_v14  ;;  %2374 = vmatprep.subr.bf16.mxu0 %v2943_v2 }
 0x140   : > { %2394 = vmatprep.subr.bf16.mxu1 %v2943_v2 }
 0x142   : > { %2375 = vmatpush3.bf16.msra.mxu0 %v2629_v15 }
 0x143   : > { %2395 = vmatpush3.bf16.msra.mxu1 %v2630_v16  ;;  %2376 = vmatprep.subr.bf16.mxu0 %v2943_v2 }
 0x144   : > { %2396 = vmatprep.subr.bf16.mxu1 %v2943_v2 }
 0x146   : > { %2377 = vmatpush3.bf16.msra.mxu0 %v2631_v17 }
 0x147   : > { %2397 = vmatpush3.bf16.msra.mxu1 %v2632_v18  ;;  %2378 = vmatprep.subr.bf16.mxu0 %v2943_v2 }
 0x148   : > { %2398 = vmatprep.subr.bf16.mxu1 %v2943_v2 }
 0x14a   : > { %2379 = vmatpush3.bf16.msra.mxu0 %v2633_v19 }
 0x14b   : > { %2399 = vmatpush3.bf16.msra.mxu1 %v2634_v20  ;;  %2380 = vmatprep.subr.bf16.mxu0 %v2943_v2 }
 0x14c   : > { %2400 = vmatprep.subr.bf16.mxu1 %v2943_v2 }
 0x14e   : > { %2381 = vmatpush3.bf16.msra.mxu0 %v2635_v21 }
 0x14f   : > { %2401 = vmatpush3.bf16.msra.mxu1 %v2636_v22  ;;  %2382 = vmatprep.subr.bf16.mxu0 %v2943_v2 }
 0x150   : > { %2402 = vmatprep.subr.bf16.mxu1 %v2943_v2 }
 0x152   : > { %2383 = vmatpush3.bf16.msra.mxu0 %v2637_v23  ;;  %v621_v23 = vld [vmem:[#allocation2 + $0x6] sm:$0x1] }
 0x153   : > { %2403 = vmatpush3.bf16.msra.mxu1 %v2638_v24  ;;  %v622_v24 = vld [vmem:[#allocation2 + $0x7] sm:$0x1] }
 0x155   : > { %2385 = vmatmul.mubr.bf16.vlgmr.msra.gmra.mrb[12].mxu0 %v613_v25 }
 0x156   : > { %2405 = vmatmul.mubr.bf16.vlgmr.msra.gmra.mrb[12].mxu1 %v614_v26 }
 0x167   : > { %v1354_v30 = vpop.xlane.xlu0 %1353 }
 0x168   : > { %v1376_v32 = vadd.f32 %v1354_v30, %v1343_v29 }
 0x16a   : > { %v1360_v28 = vpop.xlane.xlu1 %1359  ;;  %1385 = vst.msk [vmem:[#allocation3] sm:$0x1] %vm1384_vm3, %v1376_v32 }
 0x16b   : > { %v1378_v31 = vadd.f32 %v1360_v28, %v1345_v27  ;;  %v1357_v35 = vpop.xlane.xlu0 %1356 }
 0x16c   : > { %v1377_v37 = vadd.f32 %v1357_v35, %v1344_v34  ;;  %v2945_v35 = vmov (!%p2112_p9), 0.0  }
 0x16d   : > { %1387 = vst.msk [vmem:[#allocation3 + $0x2] sm:$0x1] %vm1384_vm3, %v1378_v31  ;;  %2408 = vmatprep.subr.bf16.mxu0 (!%p2112_p9), %v2945_v35  ;;  %2424 = vmatprep.mubr.msk.bf16.mxu0 (!%p2112_p9), %vm2946_vm4, %v2945_v35 }
 0x16e   : > { %v1363_v2 = vpop.xlane.xlu1 %1362  ;;  %1386 = vst.msk [vmem:[#allocation3 + $0x1] sm:$0x1] %vm1384_vm3, %v1377_v37  ;;  %v2947_v37 = vmov (!%p2112_p9), 0  }
 0x16f   : > { %v1379_v36 = vadd.f32 %v1363_v2, %v1346_v33  ;;  %v1366_v42 = vpop.xlane.xlu0 %1365  ;;  %v2641_v2 = vld [vmem:[#allocation10] sm:$0xff] (!%p2112_p9)   ;;  %2640 = vset.pattern.permute.xlu1 (!%p2112_p9), %v2947_v37  ;;  %2639 = vset.pattern.permute.xlu0 (!%p2112_p9), %v2947_v37 }
 0x170   : > { %v1380_v43 = vadd.f32 %v1366_v42, %v1347_v39  ;;  %2409 = vmatpush3.bf16.msra.mxu0 (!%p2112_p9), %v2641_v2  ;;  %v2644_v39 = vld [vmem:[#allocation10 + $0x18] sm:$0xff] (!%p2112_p9)  }
 0x171   : > { %1388 = vst.msk [vmem:[#allocation3 + $0x3] sm:$0x1] %vm1384_vm3, %v1379_v36  ;;  %v2642_v36 = vld [vmem:[#allocation10 + $0x8] sm:$0xff] (!%p2112_p9)   ;;  %2410 = vmatprep.subr.bf16.mxu0 (!%p2112_p9), %v2945_v35 }
 0x172   : > { %v1369_v40 = vpop.xlane.xlu1 %1368  ;;  %1389 = vst.msk [vmem:[#allocation3 + $0x4] sm:$0x1] %vm1384_vm3, %v1380_v43 }
 0x173   : > { %v1381_v41 = vadd.f32 %v1369_v40, %v1348_v38  ;;  %v1372_v48 = vpop.xlane.xlu0 %1371  ;;  %v2643_v38 = vld [vmem:[#allocation10 + $0x10] sm:$0xff] (!%p2112_p9)  }
 0x174   : > { %v1382_v49 = vadd.f32 %v1372_v48, %v1349_v45  ;;  %2411 = vmatpush3.bf16.msra.mxu0 (!%p2112_p9), %v2642_v36  ;;  %v1513_v40 = vld [vmem:[#allocation3 + $0x2] sm:$0x1] (!%p2112_p9) }
 0x175   : > { %1390 = vst.msk [vmem:[#allocation3 + $0x5] sm:$0x1] %vm1384_vm3, %v1381_v41  ;;  %2412 = vmatprep.subr.bf16.mxu0 (!%p2112_p9), %v2945_v35  ;;  %v1511_v41 = vld [vmem:[#allocation3] sm:$0x1] (!%p2112_p9)  ;;  %v1521_v42 = vmax.f32 (!%p2112_p9), %v1513_v40, 1.0 }
 0x176   : > { %v1375_v46 = vpop.xlane.xlu1 %1374  ;;  %1391 = vst.msk [vmem:[#allocation3 + $0x6] sm:$0x1] %vm1384_vm3, %v1382_v49  ;;  %v1519_v43 = vmax.f32 (!%p2112_p9), %v1511_v41, 1.0  ;;  %v1512_v45 = vld [vmem:[#allocation3 + $0x1] sm:$0x1] (!%p2112_p9) }
 0x177   : > { %v1383_v47 = vadd.f32 %v1375_v46, %v1350_v44  ;;  %1555 = vperm.xlu1 (!%p2112_p9), %2640, %v1521_v42  }
 0x178   : > { %v1514_v44 = vld [vmem:[#allocation3 + $0x3] sm:$0x1] (!%p2112_p9)  ;;  %2413 = vmatpush3.bf16.msra.mxu0 (!%p2112_p9), %v2643_v38  ;;  %1537 = vperm.xlu0 (!%p2112_p9), %2639, %v1519_v43  }
 0x179   : > { %1392 = vst.msk [vmem:[#allocation3 + $0x7] sm:$0x1] %vm1384_vm3, %v1383_v47  ;;  %v1522_v46 = vmax.f32 (!%p2112_p9), %v1514_v44, 1.0  ;;  %v1520_v47 = vmax.f32 (!%p2112_p9), %v1512_v45, 1.0  ;;  %v1515_v49 = vld [vmem:[#allocation3 + $0x4] sm:$0x1] (!%p2112_p9)  ;;  %2414 = vmatprep.subr.bf16.mxu0 (!%p2112_p9), %v2945_v35 }
 0x17b   : > { %1564 = vperm.xlu1 (!%p2112_p9), %2640, %v1522_v46  }
 0x17c   : > { %v1516_v48 = vld [vmem:[#allocation3 + $0x5] sm:$0x1] (!%p2112_p9)  ;;  %2415 = vmatpush3.bf16.msra.mxu0 (!%p2112_p9), %v2644_v39  ;;  %1546 = vperm.xlu0 (!%p2112_p9), %2639, %v1520_v47  }
 0x17d   : > { %2416 = vmatprep.subr.bf16.mxu0 (!%p2112_p9), %v2945_v35 }
 0x1c8   : > { %v705_v52 = vpop.f32.mrb[0].mxu0 }
 0x1c9   : > { %v1327_v53 = vadd.f32 %v705_v52, %v615_v50  ;;  %v793_v54 = vpop.f32.mrb[0].mxu1  ;;  %v2266_v55 = vpop.f32.mrb[1].mxu0  ;;  %v1524_v50 = vmax.f32 (!%p2112_p9), %v1516_v48, 1.0  ;;  %v1518_v52 = vld [vmem:[#allocation3 + $0x7] sm:$0x1] (!%p2112_p9) }
 0x1ca   : > { %v1328_v56 = vadd.f32 %v793_v54, %v616_v51  ;;  %v2286_v57 = vpop.f32.mrb[1].mxu1  ;;  %v708_v58 = vpop.f32.mrb[2].mxu0  ;;  %v1523_v51 = vmax.f32 (!%p2112_p9), %v1515_v49, 1.0  ;;  %v2645_v54 = vld [vmem:[#allocation10 + $0x20] sm:$0xff] (!%p2112_p9)   ;;  %v1526_v55 = vmax.f32 (!%p2112_p9), %v1518_v52, 1.0 }
 0x1cb   : > { %1335 = vst [vmem:[#allocation2] sm:$0x1] %v1327_v53  ;;  %v796_v59 = vpop.f32.mrb[2].mxu1  ;;  %v2267_v60 = vpop.f32.mrb[3].mxu0  ;;  %v1517_v53 = vld [vmem:[#allocation3 + $0x6] sm:$0x1] (!%p2112_p9)  ;;  %2417 = vmatpush3.bf16.msra.mxu0 (!%p2112_p9), %v2645_v54  ;;  %1582 = vperm.xlu1 (!%p2112_p9), %2640, %v1524_v50  }
 0x1cc   : > { %1336 = vst [vmem:[#allocation2 + $0x1] sm:$0x1] %v1328_v56  ;;  %v2287_v61 = vpop.f32.mrb[3].mxu1  ;;  %v1525_v56 = vmax.f32 (!%p2112_p9), %v1517_v53, 1.0  ;;  %v2646_v57 = vld [vmem:[#allocation10 + $0x28] sm:$0xff] (!%p2112_p9)   ;;  %2418 = vmatprep.subr.bf16.mxu0 (!%p2112_p9), %v2945_v35  ;;  %v2647_v58 = vld [vmem:[#allocation10 + $0x30] sm:$0xff] (!%p2112_p9)   ;;  %1573 = vperm.xlu0 (!%p2112_p9), %2639, %v1523_v51  }
 0x1cd   : > { %v2648_v59 = vld [vmem:[#allocation10 + $0x38] sm:$0xff] (!%p2112_p9)   ;;  %v1397_v60 = vld [vmem:[%s3279_s21] sm:$0xff] (!%p2112_p9) }
 0x1ce   : > { %v2649_v61 = vld [vmem:[#allocation12 + $0x40] sm:$0xff] (!%p2112_p9)  }
 0x1cf   : > { %2419 = vmatpush3.bf16.msra.mxu0 (!%p2112_p9), %v2646_v57  ;;  %1600 = vperm.xlu1 (!%p2112_p9), %2640, %v1526_v55  }
 0x1d0   : > { %2420 = vmatprep.subr.bf16.mxu0 (!%p2112_p9), %v2945_v35  ;;  %1591 = vperm.xlu0 (!%p2112_p9), %2639, %v1525_v56  }
 0x1d1   : > { %2226 = vmatprep.subr.bf16.mxu1 (!%p2112_p9), %v2649_v61 }
 0x1d2   : > { %v1527_v37 = vld [vmem:[#allocation2] sm:$0x1] (!%p2112_p9) }
 0x1d3   : > { %2421 = vmatpush3.bf16.msra.mxu0 (!%p2112_p9), %v2647_v58  ;;  %v1528_v40 = vld [vmem:[#allocation2 + $0x1] sm:$0x1] (!%p2112_p9) }
 0x1d4   : > { %2422 = vmatprep.subr.bf16.mxu0 (!%p2112_p9), %v2945_v35 }
 0x1d7   : > { %2423 = vmatpush3.bf16.msra.mxu0 (!%p2112_p9), %v2648_v59 }
 0x1e8   : > { %v881_v0 = vpop.f32.mrb[4].mxu0 }
 0x1e9   : > { %v1329_v1 = vadd.f32 %v881_v0, %v617_v62  ;;  %v969_v3 = vpop.f32.mrb[4].mxu1  ;;  %v2306_v4 = vpop.f32.mrb[5].mxu0  ;;  %v2650_v62 = vld [vmem:[#allocation12] sm:$0xff] (!%p2112_p9)   ;;  %v1398_v0 = vpack.c.bf16 (!%p2112_p9), %v1397_v60, %v1397_v60 }
 0x1ea   : > { %v1330_v5 = vadd.f32 %v969_v3, %v618_v63  ;;  %v2326_v6 = vpop.f32.mrb[5].mxu1  ;;  %v884_v7 = vpop.f32.mrb[6].mxu0  ;;  %v2651_v63 = vld [vmem:[#allocation12 + $0x48] sm:$0xff] (!%p2112_p9)   ;;  %2227 = vmatpush3.bf16.msra.mxu1 (!%p2112_p9), %v2650_v62  ;;  %v2653_v3 = vld [vmem:[#allocation12 + $0x50] sm:$0xff] (!%p2112_p9)  }
 0x1eb   : > { %1337 = vst [vmem:[#allocation2 + $0x2] sm:$0x1] %v1329_v1  ;;  %v972_v8 = vpop.f32.mrb[6].mxu1  ;;  %v2307_v9 = vpop.f32.mrb[7].mxu0  ;;  %v2652_v1 = vld [vmem:[#allocation12 + $0x8] sm:$0xff] (!%p2112_p9)   ;;  %2228 = vmatprep.subr.bf16.mxu1 (!%p2112_p9), %v2651_v63  ;;  %2425 = vmatmul.mubr.bf16.vlgmr.msra.gmra.mrb[0].mxu0 (!%p2112_p9), %v1398_v0  ;;  %v2654_v4 = vld [vmem:[#allocation12 + $0x10] sm:$0xff] (!%p2112_p9)  }
 0x1ec   : > { %1338 = vst [vmem:[#allocation2 + $0x3] sm:$0x1] %v1330_v5  ;;  %v2327_v10 = vpop.f32.mrb[7].mxu1  ;;  %v2655_v5 = vld [vmem:[#allocation12 + $0x58] sm:$0xff] (!%p2112_p9)   ;;  %v2657_v7 = vld [vmem:[#allocation12 + $0x60] sm:$0xff] (!%p2112_p9)   ;;  %v2659_v9 = vld [vmem:[#allocation12 + $0x68] sm:$0xff] (!%p2112_p9)  }
 0x1ed   : > { %v2656_v6 = vld [vmem:[#allocation12 + $0x18] sm:$0xff] (!%p2112_p9)   ;;  %v2658_v8 = vld [vmem:[#allocation12 + $0x20] sm:$0xff] (!%p2112_p9)   ;;  %v2660_v10 = vld [vmem:[#allocation12 + $0x28] sm:$0xff] (!%p2112_p9)  }
 0x1ee   : > { %2229 = vmatpush3.bf16.msra.mxu1 (!%p2112_p9), %v2652_v1 }
 0x1ef   : > { %2230 = vmatprep.subr.bf16.mxu1 (!%p2112_p9), %v2653_v3 }
 0x1f2   : > { %2231 = vmatpush3.bf16.msra.mxu1 (!%p2112_p9), %v2654_v4  ;;  %v1529_v38 = vld [vmem:[#allocation2 + $0x2] sm:$0x1] (!%p2112_p9) }
 0x1f3   : > { %2232 = vmatprep.subr.bf16.mxu1 (!%p2112_p9), %v2655_v5  ;;  %v1530_v39 = vld [vmem:[#allocation2 + $0x3] sm:$0x1] (!%p2112_p9) }
 0x1f6   : > { %2233 = vmatpush3.bf16.msra.mxu1 (!%p2112_p9), %v2656_v6 }
 0x1f7   : > { %2234 = vmatprep.subr.bf16.mxu1 (!%p2112_p9), %v2657_v7 }
 0x1fa   : > { %2235 = vmatpush3.bf16.msra.mxu1 (!%p2112_p9), %v2658_v8 }
 0x1fb   : > { %2236 = vmatprep.subr.bf16.mxu1 (!%p2112_p9), %v2659_v9 }
 0x1fe   : > { %2237 = vmatpush3.bf16.msra.mxu1 (!%p2112_p9), %v2660_v10 }
 0x208   : > { %v1057_v13 = vpop.f32.mrb[8].mxu0 }
 0x209   : > { %v1331_v14 = vadd.f32 %v1057_v13, %v619_v11  ;;  %v1145_v15 = vpop.f32.mrb[8].mxu1  ;;  %v2346_v16 = vpop.f32.mrb[9].mxu0  ;;  %v2661_v11 = vld [vmem:[#allocation12 + $0x70] sm:$0xff] (!%p2112_p9)   ;;  %v2663_v13 = vld [vmem:[#allocation12 + $0x78] sm:$0xff] (!%p2112_p9)  }
 0x20a   : > { %v1332_v17 = vadd.f32 %v1145_v15, %v620_v12  ;;  %v2366_v18 = vpop.f32.mrb[9].mxu1  ;;  %v1060_v19 = vpop.f32.mrb[10].mxu0  ;;  %v2662_v12 = vld [vmem:[#allocation12 + $0x30] sm:$0xff] (!%p2112_p9)   ;;  %2238 = vmatprep.subr.bf16.mxu1 (!%p2112_p9), %v2661_v11  ;;  %v2664_v15 = vld [vmem:[#allocation12 + $0x38] sm:$0xff] (!%p2112_p9)  }
 0x20b   : > { %1339 = vst [vmem:[#allocation2 + $0x4] sm:$0x1] %v1331_v14  ;;  %v1148_v20 = vpop.f32.mrb[10].mxu1  ;;  %v2347_v21 = vpop.f32.mrb[11].mxu0  ;;  %2239 = vmatpush3.bf16.msra.mxu1 (!%p2112_p9), %v2662_v12  ;;  %v1540_v14 = vlaneseq (!%p2112_p9)  ;;  %v2113_v12 = vld [vmem:[%s3635_s24] ss:$0 sm:$0xff] (!%p2112_p9) }
 0x20c   : > { %1340 = vst [vmem:[#allocation2 + $0x5] sm:$0x1] %v1332_v17  ;;  %v2367_v22 = vpop.f32.mrb[11].mxu1  ;;  %2240 = vmatprep.subr.bf16.mxu1 (!%p2112_p9), %v2663_v13  ;;  %v1556_v18 = vpop.permute.xlu1 (!%p2112_p9), %1555 }
 0x20d   : > { %v1541_v16 = vshrl.u32 (!%p2112_p9), %v1540_v14, 7  ;;  %v1538_v20 = vpop.permute.xlu0 (!%p2112_p9), %1537 }
 0x20f   : > { %2241 = vmatpush3.bf16.msra.mxu1 (!%p2112_p9), %v2664_v15  ;;  %v1542_v17 = vsub.s32 (!%p2112_p9), 0, %v1541_v16 }
 0x210   : > { %v1565_v22 = vpop.permute.xlu1 (!%p2112_p9), %1564 }
 0x211   : > { %v1561_v19 = vrot.slane (!%p2112_p9), %v1556_v18, %v1542_v17  ;;  %v1543_v21 = vrot.slane (!%p2112_p9), %v1538_v20, %v1542_v17 }
 0x212   : > { %v1531_v49 = vld [vmem:[#allocation2 + $0x4] sm:$0x1] (!%p2112_p9) }
 0x213   : > { %2665 = vrcp.f32 (!%p2112_p9), %v1561_v19  ;;  %v1532_v47 = vld [vmem:[#allocation2 + $0x5] sm:$0x1] (!%p2112_p9) }
 0x214   : > { %2667 = vrcp.f32 (!%p2112_p9), %v1543_v21  ;;  %v2122_v21 = vld [vmem:[%s3636_s15] ss:$0 sm:$0xff] (!%p2112_p9) }
 0x226   : > { %1396 = sbr.rel (%p2112_p9) target bundleno = 936 (0x3a8), region = 76 }
 0x228   : > { %v1233_v25 = vpop.f32.mrb[12].mxu0 }
 0x229   : > { %v1333_v26 = vadd.f32 %v1233_v25, %v621_v23  ;;  %v1321_v27 = vpop.f32.mrb[12].mxu1  ;;  %v2386_v28 = vpop.f32.mrb[13].mxu0  ;;  %v1570_v23 = vrot.slane (!%p2112_p9), %v1565_v22, %v1542_v17 }
 0x22a   : > { %v1334_v29 = vadd.f32 %v1321_v27, %v622_v24  ;;  %v2406_v30 = vpop.f32.mrb[13].mxu1  ;;  %v1236_v31 = vpop.f32.mrb[14].mxu0 }
 0x22b   : > { %1341 = vst [vmem:[#allocation2 + $0x6] sm:$0x1] %v1333_v26  ;;  %v1324_v32 = vpop.f32.mrb[14].mxu1  ;;  %v2387_v33 = vpop.f32.mrb[15].mxu0  ;;  %2669 = vrcp.f32 (!%p2112_p9), %v1570_v23 }
 0x22c   : > { %1342 = vst [vmem:[#allocation2 + $0x7] sm:$0x1] %v1334_v29  ;;  %v2407_v34 = vpop.f32.mrb[15].mxu1  ;;  %v1547_v24 = vpop.permute.xlu0 (!%p2112_p9), %1546 }
 0x22d   : > { %v1552_v25 = vrot.slane %v1547_v24, %v1542_v17  ;;  %v2666_v31 = vpop.eup %2665  ;;  %v2948_v34 = vmov 1966171168  }
 0x22e   : > { %v1636_v2 = vunpack.c.l.s4 %v2948_v34  ;;  %v2668_v35 = vpop.eup %2667  ;;  %v1612_v43 = vmul.f32 %v2666_v31, %v1529_v38 }
 0x22f   : > { %2671 = vrcp.f32 %v1552_v25  ;;  %v1608_v42 = vmul.f32 %v2668_v35, %v1527_v37 }
 0x230   : > { %v1637_v44 = vunpack.c.0.s8 %v1636_v2 }
 0x232   : > { %v1640_v53 = vsub.s32 %v1637_v44, %v1541_v16  ;;  %v1533_v58 = vld [vmem:[#allocation2 + $0x6] sm:$0x1] }
 0x233   : > { %v1534_v56 = vld [vmem:[#allocation2 + $0x7] sm:$0x1] }
 0x235   : > { %v2670_v41 = vpop.eup %2669 }
 0x236   : > { %v1614_v46 = vmul.f32 %v2670_v41, %v1530_v39 }
 0x238   : > { %v1632_v52 = vcombine.low %v1612_v43, %v1614_v46 }
 0x239   : > { %v2672_v45 = vpop.eup %2671 }
 0x23a   : > { %v1610_v48 = vmul.f32 %v2672_v45, %v1528_v40  ;;  %v1648_v62 = vrot.slane %v1632_v52, %v1640_v53 }
 0x23c   : > { %v1631_v51 = vcombine.low %v1608_v42, %v1610_v48 }
 0x23e   : > { %v1641_v61 = vrot.slane %v1631_v51, %v1640_v53 }
 0x240   : > { %v1663_v5 = vcombine.low %v1641_v61, %v1648_v62 }
 0x242   : > { %v1671_v8 = vrot.slane %v1663_v5, %v1640_v53 }
 0x24a   : > { %v1583_v26 = vpop.permute.xlu1 %1582 }
 0x24b   : > { %v1588_v27 = vrot.slane %v1583_v26, %v1542_v17  ;;  %v1574_v28 = vpop.permute.xlu0 %1573 }
 0x24c   : > { %v1579_v29 = vrot.slane %v1574_v28, %v1542_v17 }
 0x24d   : > { %2673 = vrcp.f32 %v1588_v27 }
 0x24e   : > { %2675 = vrcp.f32 %v1579_v29  ;;  %v1601_v30 = vpop.permute.xlu1 %1600 }
 0x24f   : > { %v1606_v32 = vrot.slane %v1601_v30, %v1542_v17  ;;  %v1592_v33 = vpop.permute.xlu0 %1591 }
 0x250   : > { %v1597_v36 = vrot.slane %v1592_v33, %v1542_v17 }
 0x251   : > { %2677 = vrcp.f32 %v1606_v32 }
 0x252   : > { %2679 = vrcp.f32 %v1597_v36 }
 0x257   : > { %v2674_v50 = vpop.eup %2673 }
 0x258   : > { %v2676_v54 = vpop.eup %2675  ;;  %v1618_v55 = vmul.f32 %v2674_v50, %v1532_v47 }
 0x259   : > { %v1616_v57 = vmul.f32 %v2676_v54, %v1531_v49 }
 0x25b   : > { %v2678_v59 = vpop.eup %2677  ;;  %v1633_v60 = vcombine.low %v1616_v57, %v1618_v55 }
 0x25c   : > { %v2680_v63 = vpop.eup %2679  ;;  %v1622_v0 = vmul.f32 %v2678_v59, %v1534_v56 }
 0x25d   : > { %v1620_v1 = vmul.f32 %v2680_v63, %v1533_v58  ;;  %v1655_v4 = vrot.slane %v1633_v60, %v1640_v53 }
 0x25f   : > { %v1634_v3 = vcombine.low %v1620_v1, %v1622_v0 }
 0x261   : > { %v1662_v6 = vrot.slane %v1634_v3, %v1640_v53 }
 0x263   : > { %v1664_v7 = vcombine.low %v1655_v4, %v1662_v6 }
 0x265   : > { %v1678_v9 = vrot.slane %v1664_v7, %v1640_v53 }
 0x267   : > { %v1679_v10 = vcombine.low %v1671_v8, %v1678_v9 }
 0x269   : > { %v1682_v11 = vpack.c.bf16 %v1679_v10, %v1679_v10 }
 0x26b   : > { %1850 = vmatprep.mubr.bf16.mxu1 %v1682_v11 }
 0x2be   : > { %v1504_v13 = vpop.f32.mrb[0].mxu0 }
 0x2bf   : > { %v1505_v14 = vadd.f32 %v2113_v12, %v1504_v13  ;;  %v2426_v15 = vpop.f32.mrb[1].mxu0 }
 0x2c0   : > { %v1507_v16 = vpop.f32.mrb[2].mxu0 }
 0x2c1   : > { %2681 = vtanh.f32 %v1505_v14  ;;  %v2427_v17 = vpop.f32.mrb[3].mxu0 }
 0x2cb   : > { %v2682_v18 = vpop.eup %2681 }
 0x2cc   : > { %v1681_v19 = vpack.c.bf16 %v2682_v18, %v2682_v18 }
 0x2ce   : > { %1851 = vmatmul.mubr.bf16.vlgmr.msra.gmra.mrb[0].mxu1 %v1681_v19 }
 0x3a1   : > { %v2242_v20 = vpop.f32.mrb[0].mxu1 }
 0x3a2   : > { %v2243_v22 = vpop.f32.mrb[1].mxu1 }
 0x3a3   : > { %v2244_v23 = vadd.f32 %v2243_v22, %v2242_v20  ;;  %v2245_v24 = vpop.f32.mrb[2].mxu1 }
 0x3a4   : > { %v2246_v25 = vpop.f32.mrb[3].mxu1 }
 0x3a5   : > { %v1853_v26 = vadd.f32 %v2244_v23, %v2122_v21 }
 0x3a7   : > { %1858 = vst [vmem:[%s3299_s20] sm:$0xff] %v1853_v26 }
 0x3a8 PF: > { %s3637_s19 = sld [smem:[#allocation23_spill]]  ;;  %s3638_s13 = sld [smem:[#allocation29_spill]] }
 0x3a9   : > { %s3639_s6 = sld [smem:[#allocation35_spill]]  ;;  %s1873_s4 = sshll.u32 %s3299_s20, 4  ;;  %s1874_s4 = int_to_ptr.vmem [resolvable:$true] %s1873_s4 }
 0x3aa   : > { %s1860_s3 = scalar_lea.sflag [#allocation6], %s3275_s8  ;;  %s2795_s17 = scalar_lea.vmem %s1874_s4, 128 }
 0x3ab   : > { %p2796_p6 = scmp.ne.s32.totalorder %s1874_s4, %s2795_s17  ;;  %s2949_s30 = smov [#allocation13]  }
 0x3ac   : > { %s2799_s0 = sshll.u32 %s2949_s30, 4  ;;  %s2800_s0 = int_to_ptr.vmem [resolvable:$false] %s2799_s0 }
 0x3ad   : > { %s2801_s12 = scalar_lea.vmem %s2800_s0, 256  ;;  %p2802_p7 = scmp.lt.s32.totalorder %s1874_s4, %s2800_s0 }
 0x3ae   : > { %s2140_s21 = sshll.u32 %s3637_s19, 7  ;;  %p3640_p1 = scmp.ne.s32.totalorder %s3638_s13, 0 }
 0x3af   : > { %s3516_s22 = scalar_lea.hbm %s3639_s6, %s2140_s21  ;;  %p2803_p13 = scmp.lt.s32.totalorder %s2801_s12, %s2795_s17 }
 0x3b0   : > { %p2797_p3 = pnand %p2796_p6, %p3640_p1 }
 0x3b1   : > { %p2804_p4 = por %p2803_p13, %p2802_p7 }
 0x3b2   : > { %p2798_p12 = pneg %p2797_p3 }
 0x3b4   : > { %p2805_p10 = pnand %p2804_p4, %p2798_p12 }
 0x3b6   : > { %2808 = shalt.err (!%p2805_p10)
}
 0x3b7   : > { %s2809_s8 = scalar_lea.hbm %s3516_s22, 128  ;;  %s2813_s14 = scalar_lea.hbm %s3639_s6, 256 }
 0x3b8   : > { %p2810_p0 = scmp.ne.s32.totalorder %s3516_s22, %s2809_s8  ;;  %p2814_p2 = scmp.lt.u32.totalorder %s3516_s22, %s3639_s6 }
 0x3b9   : > { %p2815_p8 = scmp.lt.u32.totalorder %s2813_s14, %s2809_s8  ;;  %p2817_p6 = scmp.lt.u32.totalorder %s2809_s8, %s3516_s22 }
 0x3ba   : > { %p2811_p11 = pnand %p2810_p0, %p3640_p1 }
 0x3bb   : > { %p2816_p9 = por %p2815_p8, %p2814_p2 }
 0x3bc   : > { %p2812_p5 = pneg %p2811_p11 }
 0x3bd   : > { %p2818_p3 = por %p2817_p6, %p2816_p9 }
 0x3bf   : > { %p2819_p12 = pnand %p2818_p3, %p2812_p5 }
 0x3c1   : > { %2822 = shalt.err (!%p2819_p12)
}
 0x3c2   : > { %2449 = dma.vmem_to_hbm [thread:$0]  (%p3640_p1), %s1874_s4, 128, %s3516_s22, %s1860_s3  }
 0x3c3 PF: > { %s3641_s27 = sld [smem:[#allocation21_spill]]  ;;  %s3642_s15 = sld [smem:[#allocation30_spill]] }
 0x3c4   : > { %p2466_p7 = scmp.ge.s32.totalorder %s2925_s11, 2 }
 0x3c9   : > { %s1885_s19 = sand.u32 1, %s3641_s27   ;;  %p3643_p13 = scmp.ne.s32.totalorder %s3642_s15, 0 }
 0x3ca   : > { %s1886_s21 = scalar_lea.sflag [#allocation6], %s1885_s19 }
 0x3cb   : > { %p2459_p4 = pnand %p2466_p7, %p3643_p13 }
 0x3cd   : > { %2880 = dma.done.wait (!%p2459_p4), %s1886_s21, 128  }
 0x3ce   : > { %2882 = vsyncadd (!%p2459_p4), %s1886_s21, 4294967168  ;;  %s27_s11 = sadd.s32 1, %s2925_s11   ;;  %s3644_s23 = sld [smem:[#allocation27_spill]] }
 0x3cf   : > { %p24_p10 = scmp.ge.s32.totalorder %s27_s11, 6   ;;  %s3645_s13 = sld [smem:[#allocation26_spill]] }
 0x3d0   : > { %s3646_s18 = sld [smem:[#allocation24_spill]]  ;;  %s3647_s22 = sld [smem:[#allocation25_spill]] }
 0x3d1   : > { %s3648_s24 = smov %s2889_s25  ;;  %s3649_s25 = smov %s2893_s26 }
 0x3d2   : > { %s3651_s27 = smov %s2901_s28  ;;  %s3652_s28 = smov %s2905_s29 }
 0x3d3   : > { %s3654_s30 = smov %s2917_s9  ;;  %s3655_s8 = smov %s2921_s10 }
 0x3d4   : > { %s3650_s26 = smov %s3644_s23  ;;  %26 = sbr.rel (!%p24_p10) target bundleno = 18 (0x12), region = 138 }
 0x3d5   : > { %s3653_s29 = smov %s3645_s13 }
 0x3d6   : > { %s3656_s9 = smov %s3646_s18  ;;  %s3657_s10 = smov %s3647_s22 }
 0x3db   :  { %1891 = vsyncpa [#allocation5], 1 }
 0x3dc   :  { %1893 = vsyncpa [#allocation5 + $0x1], 1 }
 0x3dd   :  { %1894 = vsyncpa [#allocation8], 1 }
 0x3de   :  { %1896 = vsyncpa [#allocation8 + $0x1], 1 }
 0x3df   :  { %1897 = vsyncpa [#allocation11], 1 }
 0x3e0   :  { %1898 = vsyncpa [#allocation6], 1 }
 0x3e1   :  { %1900 = vsyncpa [#allocation6 + $0x1], 1 }

</bundles_post_ra>
